<compile_context>
chip_gen: v5e
topology: v5e:2x2
jax: 0.10.0
libtpu: 0.0.40
codegen_flags: <defaults>
</compile_context>

<pallas_src>
import functools

import jax
import jax.numpy as jnp
from jax.experimental import pallas as pl
from jax.experimental.pallas import tpu as pltpu


def _round_up(n: int, m: int) -> int:
    return (n + m - 1) // m * m


def _choose_tiling(m: int):
    """Pick (TM, M_pad).  TM is a multiple of 256 (MXU row count on v6e/v7x),
    grows up to 1024 for large M, and prefers an even grid of >= 2 steps so the
    parallel axis can shard across both v7x TensorCores."""
    m_p = _round_up(max(m, 1), 256)
    if m_p // 256 <= 1:
        return 256, m_p
    for tm in (1024, 512, 256):
        mp2 = _round_up(m_p, tm)
        steps = mp2 // tm
        if steps >= 2 and steps % 2 == 0:
            return tm, mp2
    return 256, m_p  # fallback: >= 2 steps, possibly odd


def _gelu_tanh(x):
    # tanh-approximate GELU (EUP tanh), computed in f32.
    c = jnp.float32(0.7978845608028654)  # sqrt(2/pi)
    return 0.5 * x * (1.0 + jnp.tanh(c * (x + jnp.float32(0.044715) * x * x * x)))


def _mlp_kernel(x_ref, w1_ref, b1_ref, w2_ref, b2_ref, o_ref):
    # fc1 (bf16 MXU, f32 acc) -> +bias -> GELU (f32) -> fc2 (bf16 MXU, f32 acc) -> +bias
    h = jnp.dot(x_ref[...], w1_ref[...], preferred_element_type=jnp.float32)
    h = _gelu_tanh(h + b1_ref[...])
    o = jnp.dot(h.astype(w2_ref.dtype), w2_ref[...],
                preferred_element_type=jnp.float32)
    o_ref[...] = (o + b2_ref[...]).astype(o_ref.dtype)


def _mlp_forward(x, w1p, b1p, w2p, b2p, *, out_features):
    """x: (..., in_features). Padded weights: w1p (Din_p, Dh_p) bf16,
    b1p (1, Dh_p) f32, w2p (Dh_p, Dout_p) bf16, b2p (1, Dout_p) f32."""
    lead = x.shape[:-1]
    d_in = x.shape[-1]
    m = 1
    for s in lead:
        m *= s

    d_in_p, d_h_p = w1p.shape
    d_out_p = w2p.shape[1]
    tm, m_p = _choose_tiling(m)

    x2d = x.reshape(m, d_in)
    # Pad tokens to the grid and lanes to 128; cast to bf16 for the MXU.
    # Zero padding is mathematically inert (padded weight rows/bias cols are zero).
    xp = jnp.pad(x2d, ((0, m_p - m), (0, d_in_p - d_in))).astype(jnp.bfloat16)

    grid = (m_p // tm,)
    flops = 2 * m_p * (d_in_p * d_h_p + d_h_p * d_out_p)
    bytes_accessed = (2 * (m_p * d_in_p + d_in_p * d_h_p + d_h_p * d_out_p)
                      + 4 * (d_h_p + d_out_p + m_p * d_out_p))

    out = pl.pallas_call(
        _mlp_kernel,
        out_shape=jax.ShapeDtypeStruct((m_p, d_out_p), x.dtype),
        grid_spec=pl.GridSpec(
            grid=grid,
            in_specs=[
                # x / out tiles move with the grid; weights & biases are
                # block-invariant so they stay resident in VMEM.
                pl.BlockSpec((tm, d_in_p), lambda i: (i, 0)),
                pl.BlockSpec((d_in_p, d_h_p), lambda i: (0, 0)),
                pl.BlockSpec((1, d_h_p), lambda i: (0, 0)),
                pl.BlockSpec((d_h_p, d_out_p), lambda i: (0, 0)),
                pl.BlockSpec((1, d_out_p), lambda i: (0, 0)),
            ],
            out_specs=pl.BlockSpec((tm, d_out_p), lambda i: (i, 0)),
        ),
        compiler_params=pltpu.CompilerParams(
            dimension_semantics=("parallel",),
            vmem_limit_bytes=32 * 1024 * 1024,
        ),
        cost_estimate=pl.CostEstimate(
            flops=flops,
            transcendentals=m_p * d_h_p,
            bytes_accessed=bytes_accessed,
        ),
    )(xp, w1p, b1p, w2p, b2p)

    return out[:m, :out_features].reshape(*lead, out_features)


class Mlp:
    """MLP as used in Vision Transformer / Swin (JAX + Pallas TPU)."""

    def __init__(self, in_features, hidden_features=None, out_features=None,
                 drop=0.0, key=None):
        out_features = out_features or in_features
        hidden_features = hidden_features or in_features
        self.in_features = in_features
        self.hidden_features = hidden_features
        self.out_features = out_features
        self.drop = drop  # drop=0.0 => identity (inference semantics)

        if key is None:
            key = jax.random.PRNGKey(0)
        k1, k2, k3, k4 = jax.random.split(key, 4)
        # nn.Linear default init: U(-1/sqrt(fan_in), 1/sqrt(fan_in)) for W and b.
        b1_bound = 1.0 / (in_features ** 0.5)
        b2_bound = 1.0 / (hidden_features ** 0.5)
        # Stored as (in, out) for direct x @ W (transpose of PyTorch's (out, in)).
        self.fc1_w = jax.random.uniform(k1, (in_features, hidden_features),
                                        jnp.float32, -b1_bound, b1_bound)
        self.fc1_b = jax.random.uniform(k2, (hidden_features,), jnp.float32,
                                        -b1_bound, b1_bound)
        self.fc2_w = jax.random.uniform(k3, (hidden_features, out_features),
                                        jnp.float32, -b2_bound, b2_bound)
        self.fc2_b = jax.random.uniform(k4, (out_features,), jnp.float32,
                                        -b2_bound, b2_bound)

        # --- one-time padding / casting of the parameters (kernel-facing copies) ---
        d_in_p = _round_up(in_features, 128)
        d_h_p = _round_up(hidden_features, 128)
        d_out_p = _round_up(out_features, 128)
        self._w1p = jnp.pad(
            self.fc1_w, ((0, d_in_p - in_features), (0, d_h_p - hidden_features))
        ).astype(jnp.bfloat16)
        self._b1p = jnp.pad(self.fc1_b, (0, d_h_p - hidden_features)).reshape(1, d_h_p)
        self._w2p = jnp.pad(
            self.fc2_w, ((0, d_h_p - hidden_features), (0, d_out_p - out_features))
        ).astype(jnp.bfloat16)
        self._b2p = jnp.pad(self.fc2_b, (0, d_out_p - out_features)).reshape(1, d_out_p)

        # One compiled program: reshape + pad(x) + pallas_call + slice + reshape.
        self._forward = jax.jit(
            functools.partial(_mlp_forward, out_features=out_features))

    def __call__(self, x):
        # x: (..., in_features)
        return self._forward(x, self._w1p, self._b1p, self._w2p, self._b2p)


def _reference(x, fc1_w, fc1_b, fc2_w, fc2_b):
    h = x @ fc1_w + fc1_b
    h = _gelu_tanh(h.astype(jnp.float32))
    return h @ fc2_w + fc2_b


if __name__ == "__main__":
    key = jax.random.PRNGKey(0)
    k_param, k_x = jax.random.split(key)

    # Small Swin-like shapes: batch=2, tokens=256, in_features=96, hidden=4*96.
    B, N, D = 2, 256, 96
    mlp = Mlp(in_features=D, hidden_features=4 * D, key=k_param)

    x = jax.random.normal(k_x, (B, N, D), jnp.float32)

    out = mlp(x)
    out = jax.block_until_ready(out)

    ref = _reference(x, mlp.fc1_w, mlp.fc1_b, mlp.fc2_w, mlp.fc2_b)
    assert out.shape == (B, N, D), out.shape
    # bf16 MXU operands (f32 accumulation / bias / GELU): tolerance relaxed vs f32.
    assert jnp.allclose(out, ref, atol=2e-2, rtol=2e-2), float(
        jnp.max(jnp.abs(out - ref)))

    print("KERNEL_OK")
</pallas_src>

<mosaic_0001>
module attributes {stable_mosaic.version = 11 : i64} {
  func.func @_mlp_kernel(%arg0: i32, %arg1: memref<256x128xbf16, #tpu.memory_space<vmem>>, %arg2: memref<128x384xbf16, #tpu.memory_space<vmem>>, %arg3: memref<1x384xf32, #tpu.memory_space<vmem>>, %arg4: memref<384x128xbf16, #tpu.memory_space<vmem>>, %arg5: memref<1x128xf32, #tpu.memory_space<vmem>>, %arg6: memref<256x128xf32, #tpu.memory_space<vmem>>) attributes {dimension_semantics = [#tpu.dimension_semantics<parallel>], iteration_bounds = array<i64: 2>, scalar_prefetch = 0 : i64, scratch_operands = 0 : i64, tpu.core_type = #tpu.core_type<tc>, window_params = [{transform_indices = @transform_0, window_bounds = array<i64: 256, 128>}, {pipeline_mode = #tpu.pipeline_mode<synchronous>, transform_indices = @transform_1, window_bounds = array<i64: 128, 384>}, {pipeline_mode = #tpu.pipeline_mode<synchronous>, transform_indices = @transform_2, window_bounds = array<i64: 1, 384>}, {pipeline_mode = #tpu.pipeline_mode<synchronous>, transform_indices = @transform_3, window_bounds = array<i64: 384, 128>}, {pipeline_mode = #tpu.pipeline_mode<synchronous>, transform_indices = @transform_4, window_bounds = array<i64: 1, 128>}, {transform_indices = @transform_5, window_bounds = array<i64: 256, 128>}]} {
    %c0 = arith.constant 0 : index
    %c0_0 = arith.constant 0 : index
    %0 = vector.load %arg1[%c0, %c0_0] : memref<256x128xbf16, #tpu.memory_space<vmem>>, vector<256x128xbf16>
    %c0_1 = arith.constant 0 : index
    %c0_2 = arith.constant 0 : index
    %1 = vector.load %arg2[%c0_1, %c0_2] : memref<128x384xbf16, #tpu.memory_space<vmem>>, vector<128x384xbf16>
    %cst = arith.constant dense<0.000000e+00> : vector<256x384xf32>
    %2 = tpu.matmul %0, %1, %cst {dimension_numbers = #tpu.dot_dimension_numbers<[1], [0], [0], [1], [0, 0, 1, 1], [], []>} : vector<256x128xbf16>, vector<128x384xbf16>, vector<256x384xf32> -> vector<256x384xf32>
    %c0_3 = arith.constant 0 : index
    %c0_4 = arith.constant 0 : index
    %3 = vector.load %arg3[%c0_3, %c0_4] : memref<1x384xf32, #tpu.memory_space<vmem>>, vector<1x384xf32>
    %4 = vector.broadcast %3 : vector<1x384xf32> to vector<256x384xf32>
    %5 = arith.addf %2, %4 : vector<256x384xf32>
    %cst_5 = arith.constant 5.000000e-01 : f32
    %6 = vector.broadcast %cst_5 : f32 to vector<256x384xf32>
    %7 = arith.mulf %6, %5 : vector<256x384xf32>
    %cst_6 = arith.constant 4.471500e-02 : f32
    %8 = vector.broadcast %cst_6 : f32 to vector<256x384xf32>
    %9 = arith.mulf %8, %5 : vector<256x384xf32>
    %10 = arith.mulf %9, %5 : vector<256x384xf32>
    %11 = arith.mulf %10, %5 : vector<256x384xf32>
    %12 = arith.addf %5, %11 : vector<256x384xf32>
    %cst_7 = arith.constant 0.797884583 : f32
    %13 = vector.broadcast %cst_7 : f32 to vector<256x384xf32>
    %14 = arith.mulf %13, %12 : vector<256x384xf32>
    %15 = math.tanh %14 : vector<256x384xf32>
    %cst_8 = arith.constant 1.000000e+00 : f32
    %16 = vector.broadcast %cst_8 : f32 to vector<256x384xf32>
    %17 = arith.addf %16, %15 : vector<256x384xf32>
    %18 = arith.mulf %7, %17 : vector<256x384xf32>
    %19 = arith.truncf %18 : vector<256x384xf32> to vector<256x384xbf16>
    %c0_9 = arith.constant 0 : index
    %c0_10 = arith.constant 0 : index
    %20 = vector.load %arg4[%c0_9, %c0_10] : memref<384x128xbf16, #tpu.memory_space<vmem>>, vector<384x128xbf16>
    %cst_11 = arith.constant dense<0.000000e+00> : vector<256x128xf32>
    %21 = tpu.matmul %19, %20, %cst_11 {dimension_numbers = #tpu.dot_dimension_numbers<[1], [0], [0], [1], [0, 0, 1, 1], [], []>} : vector<256x384xbf16>, vector<384x128xbf16>, vector<256x128xf32> -> vector<256x128xf32>
    %c0_12 = arith.constant 0 : index
    %c0_13 = arith.constant 0 : index
    %22 = vector.load %arg5[%c0_12, %c0_13] : memref<1x128xf32, #tpu.memory_space<vmem>>, vector<1x128xf32>
    %23 = vector.broadcast %22 : vector<1x128xf32> to vector<256x128xf32>
    %24 = arith.addf %21, %23 : vector<256x128xf32>
    %c0_14 = arith.constant 0 : index
    %c0_15 = arith.constant 0 : index
    %25 = vector.load %arg6[%c0_14, %c0_15] : memref<256x128xf32, #tpu.memory_space<vmem>>, vector<256x128xf32>
    tpu.vector_store %arg6[%c0_14, %c0_15], %24 {strides = array<i32>} : memref<256x128xf32, #tpu.memory_space<vmem>>, vector<256x128xf32>,
    return
  }
  func.func @transform_0(%arg0: i32) -> (i32, i32) {
    %c0_i32 = arith.constant 0 : i32
    %c0_i32_0 = arith.constant 0 : i32
    return %arg0, %c0_i32 : i32, i32
  }
  func.func @transform_1(%arg0: i32) -> (i32, i32) {
    %c0_i32 = arith.constant 0 : i32
    %c0_i32_0 = arith.constant 0 : i32
    %c0_i32_1 = arith.constant 0 : i32
    return %c0_i32, %c0_i32_0 : i32, i32
  }
  func.func @transform_2(%arg0: i32) -> (i32, i32) {
    %c0_i32 = arith.constant 0 : i32
    %c0_i32_0 = arith.constant 0 : i32
    %c0_i32_1 = arith.constant 0 : i32
    return %c0_i32, %c0_i32_0 : i32, i32
  }
  func.func @transform_3(%arg0: i32) -> (i32, i32) {
    %c0_i32 = arith.constant 0 : i32
    %c0_i32_0 = arith.constant 0 : i32
    %c0_i32_1 = arith.constant 0 : i32
    return %c0_i32, %c0_i32_0 : i32, i32
  }
  func.func @transform_4(%arg0: i32) -> (i32, i32) {
    %c0_i32 = arith.constant 0 : i32
    %c0_i32_0 = arith.constant 0 : i32
    %c0_i32_1 = arith.constant 0 : i32
    return %c0_i32, %c0_i32_0 : i32, i32
  }
  func.func @transform_5(%arg0: i32) -> (i32, i32) {
    %c0_i32 = arith.constant 0 : i32
    %c0_i32_0 = arith.constant 0 : i32
    return %arg0, %c0_i32 : i32, i32
  }
}

</mosaic_0001>

<bundles_post_ra>
// kernel: _mlp_forward.1
= control target key start
LH: loop header
LB: loop body
LE: loop exit
PB: predicated region body
PF: predicated region fallthrough
CT: control target
= control target key end

     0   :  { %s2850_s18 = smov 0   ;;  %s4149_s0 = inlined_call_operand.vmem [shape: bf16[512,128], index: 0, kind: input, shape index: {}]   ;;  %s4150_s1 = inlined_call_operand.vmem [shape: bf16[128,384], index: 1, kind: input, shape index: {}]   ;;  %s4151_s2 = inlined_call_operand.vmem [shape: f32[1,384], index: 2, kind: input, shape index: {}]   ;;  %s4152_s3 = inlined_call_operand.vmem [shape: bf16[384,128], index: 3, kind: input, shape index: {}]   ;;  %s4153_s4 = inlined_call_operand.vmem [shape: f32[1,128], index: 4, kind: input, shape index: {}]   ;;  %s4154_s5 = inlined_call_operand.vmem [shape: f32[512,128], index: 5, kind: output, shape index: {}]  }
   0x1 LB: > { %s2254_s19 = sadd.s32 4294967295, %s2818_s18   ;;  %p2258_p0 = scmp.ge.s32.totalorder %s2818_s18, 1  ;;  %s2818_s18 = sphi %s2850_s18, %s15_s18  }
   0x2   : > { %p188_p1 = scmp.lt.s32.totalorder %s2818_s18, 3 }
   0x4   : > { %p189_p2 = pnand %p2258_p0, %p188_p1 }
   0x6   : > { %192 = sbr.rel (%p189_p2) target bundleno = 715 (0x2cb), region = 40 }
   0xb   : > { %v2413_v0 = vld [vmem:[%s4150_s1 + $0xa8] sm:$0xf]  ;;  %v2559_v1 = vld [vmem:[%s4150_s1 + $0xb0] sm:$0xf0]  ;;  %v2558_v2 = vld [vmem:[%s4150_s1 + $0xac] sm:$0xf] }
   0xc   : > { %v2414_v3 = vor.u32 %v2559_v1, %v2413_v0  ;;  %v2415_v4 = vld [vmem:[%s4150_s1 + $0xb4] sm:$0xf0]  ;;  %v2401_v5 = vld [vmem:[%s4150_s1 + $0x90] sm:$0xf]  ;;  %v2556_v6 = vld [vmem:[%s4150_s1 + $0x98] sm:$0xf0] }
   0xd   : > { %v2418_v7 = vor.u32 %v2558_v2, %v2415_v4  ;;  %v2555_v8 = vld [vmem:[%s4150_s1 + $0x94] sm:$0xf]  ;;  %v2403_v9 = vld [vmem:[%s4150_s1 + $0x9c] sm:$0xf0]  ;;  %v2402_v10 = vor.u32 %v2556_v6, %v2401_v5  ;;  %v2389_v12 = vld [vmem:[%s4150_s1 + $0x78] sm:$0xf] }
   0xe   : > { %524 = vmatpush.bf16.msra.mxu0 %v2414_v3  ;;  %2585 = vmatpush.bf16.msra.mxu2 %v2414_v3  ;;  %v2406_v11 = vor.u32 %v2555_v8, %v2403_v9  ;;  %v2553_v13 = vld [vmem:[%s4150_s1 + $0x80] sm:$0xf0]  ;;  %v2552_v14 = vld [vmem:[%s4150_s1 + $0x7c] sm:$0xf]  ;;  %v2391_v15 = vld [vmem:[%s4150_s1 + $0x84] sm:$0xf0] }
   0xf   : > { %613 = vmatpush.bf16.msra.mxu1 %v2418_v7  ;;  %2593 = vmatpush.bf16.msra.mxu3 %v2418_v7  ;;  %v2390_v16 = vor.u32 %v2553_v13, %v2389_v12  ;;  %v2394_v17 = vor.u32 %v2552_v14, %v2391_v15  ;;  %v2377_v18 = vld [vmem:[%s4150_s1 + $0x60] sm:$0xf]  ;;  %v2550_v19 = vld [vmem:[%s4150_s1 + $0x68] sm:$0xf0]  ;;  %v2549_v20 = vld [vmem:[%s4150_s1 + $0x64] sm:$0xf] }
  0x10   : > { %v2379_v21 = vld [vmem:[%s4150_s1 + $0x6c] sm:$0xf0]  ;;  %v2378_v22 = vor.u32 %v2550_v19, %v2377_v18  ;;  %v2365_v24 = vld [vmem:[%s4150_s1 + $0x48] sm:$0xf]  ;;  %v2547_v25 = vld [vmem:[%s4150_s1 + $0x50] sm:$0xf0] }
  0x11   : > { %v2382_v23 = vor.u32 %v2549_v20, %v2379_v21  ;;  %v2546_v26 = vld [vmem:[%s4150_s1 + $0x4c] sm:$0xf]  ;;  %v2367_v27 = vld [vmem:[%s4150_s1 + $0x54] sm:$0xf0]  ;;  %s2259_s12 = sshll.u32 %s2254_s19, 5  ;;  %v2366_v28 = vor.u32 %v2547_v25, %v2365_v24  ;;  %v2567_v24 = vld [vmem:[%s4152_s3 + $0x30] sm:$0xff] }
  0x12   : > { %525 = vmatpush.bf16.msra.mxu0 %v2402_v10  ;;  %2586 = vmatpush.bf16.msra.mxu2 %v2402_v10  ;;  %v2370_v29 = vor.u32 %v2546_v26, %v2367_v27  ;;  %v2353_v30 = vld [vmem:[%s4150_s1 + $0x30] sm:$0xf]  ;;  %v2544_v31 = vld [vmem:[%s4150_s1 + $0x38] sm:$0xf0]  ;;  %p217_p3 = scmp.lt.s32.totalorder %s2259_s12, 63  ;;  %v2566_v26 = vld [vmem:[%s4152_s3 + $0x28] sm:$0xff] }
  0x13   : > { %614 = vmatpush.bf16.msra.mxu1 %v2406_v11  ;;  %2594 = vmatpush.bf16.msra.mxu3 %v2406_v11  ;;  %v2543_v32 = vld [vmem:[%s4150_s1 + $0x34] sm:$0xf]  ;;  %v2355_v33 = vld [vmem:[%s4150_s1 + $0x3c] sm:$0xf0]  ;;  %v2354_v34 = vor.u32 %v2544_v31, %v2353_v30  ;;  %v2341_v36 = vld [vmem:[%s4150_s1 + $0x18] sm:$0xf] }
  0x14   : > { %v2358_v35 = vor.u32 %v2543_v32, %v2355_v33  ;;  %v2541_v37 = vld [vmem:[%s4150_s1 + $0x20] sm:$0xf0]  ;;  %s4173_s12 = smov (!%p217_p3, %s2259_s12), 63  ;;  %v2540_v38 = vld [vmem:[%s4150_s1 + $0x1c] sm:$0xf]  ;;  %v2575_v25 = vld [vmem:[%s4152_s3 + $0x70] sm:$0xff] }
  0x15   : > { %v2343_v39 = vld [vmem:[%s4150_s1 + $0x24] sm:$0xf0]  ;;  %v2342_v40 = vor.u32 %v2541_v37, %v2341_v36  ;;  %v2329_v41 = vld [vmem:[%s4150_s1] sm:$0xf]  ;;  %v2538_v43 = vld [vmem:[%s4150_s1 + $0x8] sm:$0xf0] }
  0x16   : > { %526 = vmatpush.bf16.msra.mxu0 %v2390_v16  ;;  %2587 = vmatpush.bf16.msra.mxu2 %v2390_v16  ;;  %v2346_v42 = vor.u32 %v2540_v38, %v2343_v39  ;;  %v2537_v44 = vld [vmem:[%s4150_s1 + $0x4] sm:$0xf]  ;;  %s2260_s11 = sshll.u32 %s4173_s12, 2  ;;  %v2331_v45 = vld [vmem:[%s4150_s1 + $0xc] sm:$0xf0]  ;;  %v2330_v48 = vor.u32 %v2538_v43, %v2329_v41  ;;  %v2574_v27 = vld [vmem:[%s4152_s3 + $0x68] sm:$0xff] }
  0x17   : > { %615 = vmatpush.bf16.msra.mxu1 %v2394_v17  ;;  %2595 = vmatpush.bf16.msra.mxu3 %v2394_v17  ;;  %v2421_v46 = vld [vmem:[%s4150_s1 + $0xb0] sm:$0xf]  ;;  %v2560_v47 = vld [vmem:[%s4150_s1 + $0xb8] sm:$0xf0]  ;;  %s2968_s22 = scalar_lea.vmem %s4149_s0, %s2260_s11  ;;  %v2334_v49 = vor.u32 %v2537_v44, %v2331_v45  ;;  %v2409_v51 = vld [vmem:[%s4150_s1 + $0x98] sm:$0xf] }
  0x18   : > { %v2422_v50 = vor.u32 %v2560_v47, %v2421_v46  ;;  %v2557_v52 = vld [vmem:[%s4150_s1 + $0xa0] sm:$0xf0]  ;;  %v2397_v56 = vld [vmem:[%s4150_s1 + $0x80] sm:$0xf]  ;;  %v2554_v57 = vld [vmem:[%s4150_s1 + $0x88] sm:$0xf0] }
  0x19   : > { %v2977_v53 = vld [vmem:[%s2968_s22] sm:$0xff]  ;;  %v2410_v55 = vor.u32 %v2557_v52, %v2409_v51  ;;  %v2398_v58 = vor.u32 %v2554_v57, %v2397_v56  ;;  %v2989_v59 = vld [vmem:[%s2968_s22 + $0x8] sm:$0xff]  ;;  %v2551_v62 = vld [vmem:[%s4150_s1 + $0x70] sm:$0xf0]  ;;  %s2262_s14 = sshll.u32 %s4173_s12, 3 }
  0x1a   : > { %527 = vmatpush.bf16.msra.mxu0 %v2378_v22  ;;  %2588 = vmatpush.bf16.msra.mxu2 %v2378_v22  ;;  %v2529_v54 = vld [vmem:[%s2968_s22 + $0x40] sm:$0xff]  ;;  %v2530_v60 = vld [vmem:[%s2968_s22 + $0x48] sm:$0xff]  ;;  %v3001_v0 = vld [vmem:[%s2968_s22 + $0x10] sm:$0xff]  ;;  %s3982_s17 = scalar_lea.vmem %s4154_s5, %s2262_s14 }
  0x1b   : > { %616 = vmatpush.bf16.msra.mxu1 %v2382_v23  ;;  %2596 = vmatpush.bf16.msra.mxu3 %v2382_v23  ;;  %v2385_v61 = vld [vmem:[%s4150_s1 + $0x68] sm:$0xf]  ;;  %v2531_v1 = vld [vmem:[%s2968_s22 + $0x50] sm:$0xff]  ;;  %v2548_v3 = vld [vmem:[%s4150_s1 + $0x58] sm:$0xf0] }
  0x1c   : > { %v2386_v63 = vor.u32 %v2551_v62, %v2385_v61  ;;  %v2373_v2 = vld [vmem:[%s4150_s1 + $0x50] sm:$0xf]  ;;  %v3013_v5 = vld [vmem:[%s2968_s22 + $0x18] sm:$0xff]  ;;  %v2545_v8 = vld [vmem:[%s4150_s1 + $0x40] sm:$0xf0] }
  0x1d   : > { %v2374_v4 = vor.u32 %v2548_v3, %v2373_v2  ;;  %v2532_v6 = vld [vmem:[%s2968_s22 + $0x58] sm:$0xff]  ;;  %v3025_v10 = vld [vmem:[%s2968_s22 + $0x20] sm:$0xff]  ;;  %v2542_v13 = vld [vmem:[%s4150_s1 + $0x28] sm:$0xf0] }
  0x1e   : > { %528 = vmatpush.bf16.msra.mxu0 %v2366_v28  ;;  %2589 = vmatpush.bf16.msra.mxu2 %v2366_v28  ;;  %v2361_v7 = vld [vmem:[%s4150_s1 + $0x38] sm:$0xf]  ;;  %v2533_v11 = vld [vmem:[%s2968_s22 + $0x60] sm:$0xff]  ;;  %v3037_v15 = vld [vmem:[%s2968_s22 + $0x28] sm:$0xff] }
  0x1f   : > { %617 = vmatpush.bf16.msra.mxu1 %v2370_v29  ;;  %2597 = vmatpush.bf16.msra.mxu3 %v2370_v29  ;;  %v2362_v9 = vor.u32 %v2545_v8, %v2361_v7  ;;  %v2349_v12 = vld [vmem:[%s4150_s1 + $0x20] sm:$0xf]  ;;  %v2534_v16 = vld [vmem:[%s2968_s22 + $0x68] sm:$0xff]  ;;  %v2539_v18 = vld [vmem:[%s4150_s1 + $0x10] sm:$0xf0] }
  0x20   : > { %v2350_v14 = vor.u32 %v2542_v13, %v2349_v12  ;;  %v2337_v17 = vld [vmem:[%s4150_s1 + $0x8] sm:$0xf]  ;;  %v3049_v20 = vld [vmem:[%s2968_s22 + $0x30] sm:$0xff]  ;;  %v2568_v22 = vld [vmem:[%s4152_s3 + $0x38] sm:$0xff] }
  0x21   : > { %v2338_v19 = vor.u32 %v2539_v18, %v2337_v17  ;;  %v2535_v21 = vld [vmem:[%s2968_s22 + $0x70] sm:$0xff]  ;;  %v2576_v23 = vld [vmem:[%s4152_s3 + $0x78] sm:$0xff]  ;;  %v2565_v28 = vld [vmem:[%s4152_s3 + $0x20] sm:$0xff] }
  0x22   : > { %529 = vmatpush.bf16.msra.mxu0 %v2354_v34  ;;  %2590 = vmatpush.bf16.msra.mxu2 %v2354_v34  ;;  %v2573_v29 = vld [vmem:[%s4152_s3 + $0x60] sm:$0xff]  ;;  %v2528_v30 = vld [vmem:[%s2968_s22 + $0x38] sm:$0xff]  ;;  %v2563_v34 = vld [vmem:[%s4152_s3 + $0x10] sm:$0xff] }
  0x23   : > { %618 = vmatpush.bf16.msra.mxu1 %v2358_v35  ;;  %2598 = vmatpush.bf16.msra.mxu3 %v2358_v35  ;;  %v2536_v31 = vld [vmem:[%s2968_s22 + $0x78] sm:$0xff]  ;;  %v2571_v35 = vld [vmem:[%s4152_s3 + $0x50] sm:$0xff]  ;;  %v2562_v36 = vld [vmem:[%s4152_s3 + $0x8] sm:$0xff] }
  0x24   : > { %v2564_v32 = vld [vmem:[%s4152_s3 + $0x18] sm:$0xff]  ;;  %v2570_v37 = vld [vmem:[%s4152_s3 + $0x48] sm:$0xff]  ;;  %v292_v38 = vld [vmem:[%s4151_s2] sm:$0x7] }
  0x25   : > { %v2572_v33 = vld [vmem:[%s4152_s3 + $0x58] sm:$0xff]  ;;  %v3101_v39 = vperm.slane %v292_v38, 1  ;;  %v2569_v41 = vld [vmem:[%s4152_s3 + $0x40] sm:$0xff] }
  0x26   : > { %530 = vmatpush.bf16.msra.mxu0 %v2342_v40  ;;  %2591 = vmatpush.bf16.msra.mxu2 %v2342_v40  ;;  %v2561_v40 = vld [vmem:[%s4152_s3] sm:$0xff]  ;;  %v2584_v2 = vld [vmem:[%s4152_s3 + $0xb8] sm:$0xff] }
  0x27   : > { %619 = vmatpush.bf16.msra.mxu1 %v2346_v42  ;;  %2599 = vmatpush.bf16.msra.mxu3 %v2346_v42  ;;  %v3109_v42 = vperm.slane %v292_v38, 0 }
  0x2a   : > { %531 = vmatpush.bf16.msra.mxu0 %v2330_v48  ;;  %2592 = vmatpush.bf16.msra.mxu2 %v2330_v48 }
  0x2b   : > { %620 = vmatpush.bf16.msra.mxu1 %v2334_v49  ;;  %2600 = vmatpush.bf16.msra.mxu3 %v2334_v49 }
  0x2d   : > { %532 = vmatmul.bf16.vlgmr.msra.gmra.mxu0 %v2977_v53  ;;  %572 = vmatmul.bf16.vlgmr.msra.gmra.mxu2 %v2529_v54 }
  0x2e   : > { %702 = vmatpush.bf16.msrb.mxu2 %v2422_v50  ;;  %621 = vmatmul.bf16.vlgmr.msra.gmra.mxu1 %v2977_v53 }
  0x2f   : > { %661 = vmatmul.bf16.vlgmr.msra.gmra.mxu3 %v2529_v54  ;;  %1988 = vmatpush.bf16.msrb.mxu0 %v2576_v23 }
  0x30   : > { %1899 = vmatpush.bf16.msrb.mxu3 %v2568_v22  ;;  %2077 = vmatpush.bf16.msrb.mxu1 %v2584_v2 }
  0x32   : > { %703 = vmatpush.bf16.msrb.mxu2 %v2410_v55 }
  0x33   : > { %1989 = vmatpush.bf16.msrb.mxu0 %v2575_v25 }
  0x34   : > { %1900 = vmatpush.bf16.msrb.mxu3 %v2567_v24 }
  0x36   : > { %704 = vmatpush.bf16.msrb.mxu2 %v2398_v58 }
  0x37   : > { %1990 = vmatpush.bf16.msrb.mxu0 %v2574_v27 }
  0x38   : > { %1901 = vmatpush.bf16.msrb.mxu3 %v2566_v26 }
  0x3a   : > { %705 = vmatpush.bf16.msrb.mxu2 %v2386_v63 }
  0x3b   : > { %1991 = vmatpush.bf16.msrb.mxu0 %v2573_v29 }
  0x3c   : > { %1902 = vmatpush.bf16.msrb.mxu3 %v2565_v28 }
  0x3d   : > { %537 = vmatmul.bf16.gmra.mxu0 %v2989_v59  ;;  %577 = vmatmul.bf16.gmra.mxu2 %v2530_v60 }
  0x3e   : > { %626 = vmatmul.bf16.gmra.mxu1 %v2989_v59  ;;  %706 = vmatpush.bf16.msrb.mxu2 %v2374_v4 }
  0x3f   : > { %666 = vmatmul.bf16.gmra.mxu3 %v2530_v60  ;;  %1992 = vmatpush.bf16.msrb.mxu0 %v2572_v33 }
  0x40   : > { %1903 = vmatpush.bf16.msrb.mxu3 %v2564_v32 }
  0x42   : > { %707 = vmatpush.bf16.msrb.mxu2 %v2362_v9 }
  0x43   : > { %1993 = vmatpush.bf16.msrb.mxu0 %v2571_v35 }
  0x44   : > { %1904 = vmatpush.bf16.msrb.mxu3 %v2563_v34 }
  0x46   : > { %708 = vmatpush.bf16.msrb.mxu2 %v2350_v14 }
  0x47   : > { %1994 = vmatpush.bf16.msrb.mxu0 %v2570_v37 }
  0x48   : > { %1905 = vmatpush.bf16.msrb.mxu3 %v2562_v36 }
  0x4a   : > { %709 = vmatpush.bf16.msrb.mxu2 %v2338_v19 }
  0x4b   : > { %1995 = vmatpush.bf16.msrb.mxu0 %v2569_v41 }
  0x4c   : > { %1906 = vmatpush.bf16.msrb.mxu3 %v2561_v40 }
  0x4d   : > { %542 = vmatmul.bf16.gmra.mxu0 %v3001_v0  ;;  %582 = vmatmul.bf16.gmra.mxu2 %v2531_v1 }
  0x4e   : > { %631 = vmatmul.bf16.gmra.mxu1 %v3001_v0 }
  0x4f   : > { %671 = vmatmul.bf16.gmra.mxu3 %v2531_v1 }
  0x5d   : > { %547 = vmatmul.bf16.gmra.mxu0 %v3013_v5  ;;  %587 = vmatmul.bf16.gmra.mxu2 %v2532_v6 }
  0x5e   : > { %636 = vmatmul.bf16.gmra.mxu1 %v3013_v5 }
  0x5f   : > { %676 = vmatmul.bf16.gmra.mxu3 %v2532_v6 }
  0x6d   : > { %552 = vmatmul.bf16.gmra.mxu0 %v3025_v10  ;;  %592 = vmatmul.bf16.gmra.mxu2 %v2533_v11 }
  0x6e   : > { %641 = vmatmul.bf16.gmra.mxu1 %v3025_v10 }
  0x6f   : > { %681 = vmatmul.bf16.gmra.mxu3 %v2533_v11 }
  0x7d   : > { %557 = vmatmul.bf16.gmra.mxu0 %v3037_v15  ;;  %597 = vmatmul.bf16.gmra.mxu2 %v2534_v16 }
  0x7e   : > { %646 = vmatmul.bf16.gmra.mxu1 %v3037_v15 }
  0x7f   : > { %686 = vmatmul.bf16.gmra.mxu3 %v2534_v16 }
  0x8d   : > { %562 = vmatmul.bf16.gmra.mxu0 %v3049_v20  ;;  %602 = vmatmul.bf16.gmra.mxu2 %v2535_v21 }
  0x8e   : > { %651 = vmatmul.bf16.gmra.mxu1 %v3049_v20 }
  0x8f   : > { %691 = vmatmul.bf16.gmra.mxu3 %v2535_v21 }
  0x9d   : > { %567 = vmatmul.bf16.gmra.mxu0 %v2528_v30  ;;  %607 = vmatmul.bf16.gmra.mxu2 %v2536_v31 }
  0x9e   : > { %656 = vmatmul.bf16.gmra.mxu1 %v2528_v30 }
  0x9f   : > { %696 = vmatmul.bf16.gmra.mxu3 %v2536_v31 }
  0xaa   : > { %v533_v43 = vpop.f32.mrf.mxu0 }
  0xab   : > { %v534_v44 = vadd.f32 %v533_v43, %v3109_v42  ;;  %v622_v45 = vpop.f32.mrf.mxu1 }
  0xac   : > { %v623_v46 = vadd.f32 %v622_v45, %v3101_v39 }
  0xad   : > { %v887_v47 = vmul.f32 0.044715, %v534_v44  ;;  %710 = vmatmul.bf16.vlgmr.msrb.gmra.mxu2 %v2977_v53  ;;  %v791_v37 = vmul.f32 0.5, %v534_v44 }
  0xae   : > { %v888_v48 = vmul.f32 0.044715, %v623_v46  ;;  %v792_v40 = vmul.f32 0.5, %v623_v46 }
  0xaf   : > { %v983_v49 = vmul.f32 %v887_v47, %v534_v44 }
  0xb0   : > { %v984_v50 = vmul.f32 %v888_v48, %v623_v46  ;;  %v573_v51 = vpop.f32.mrf.mxu2 }
  0xb1   : > { %v3115_v52 = vadd.f32 %v573_v51, %v3109_v42  ;;  %v1079_v54 = vmul.f32 %v983_v49, %v534_v44 }
  0xb2   : > { %v535_v55 = vpop.f32.mrf.mxu0  ;;  %v1080_v56 = vmul.f32 %v984_v50, %v623_v46 }
  0xb3   : > { %v935_v57 = vmul.f32 0.044715, %v3115_v52  ;;  %v536_v58 = vadd.f32 %v535_v55, %v3109_v42  ;;  %v624_v60 = vpop.f32.mrf.mxu1  ;;  %v1175_v61 = vadd.f32 %v1079_v54, %v534_v44 }
  0xb4   : > { %v625_v62 = vadd.f32 %v624_v60, %v3101_v39  ;;  %v1176_v63 = vadd.f32 %v1080_v56, %v623_v46  ;;  %v2583_v60 = vld [vmem:[%s4152_s3 + $0xb0] sm:$0xff] }
  0xb5   : > { %v890_v53 = vmul.f32 0.044715, %v536_v58  ;;  %v1271_v1 = vmul.f32 0.7978846, %v1175_v61  ;;  %v1031_v6 = vmul.f32 %v935_v57, %v3115_v52  ;;  %v794_v51 = vmul.f32 0.5, %v536_v58  ;;  %2078 = vmatpush.bf16.msrb.mxu1 %v2583_v60 }
  0xb6   : > { %v891_v3 = vmul.f32 0.044715, %v625_v62  ;;  %v1272_v4 = vmul.f32 0.7978846, %v1176_v63  ;;  %v795_v46 = vmul.f32 0.5, %v625_v62 }
  0xb7   : > { %v986_v7 = vmul.f32 %v890_v53, %v536_v58  ;;  %2610 = vtanh.f32 %v1271_v1  ;;  %v1127_v21 = vmul.f32 %v1031_v6, %v3115_v52 }
  0xb8   : > { %v987_v8 = vmul.f32 %v891_v3, %v625_v62  ;;  %v575_v9 = vpop.f32.mrf.mxu2  ;;  %2612 = vtanh.f32 %v1272_v4 }
  0xb9   : > { %v3125_v11 = vadd.f32 %v575_v9, %v3109_v42  ;;  %v1082_v12 = vmul.f32 %v986_v7, %v536_v58  ;;  %v1223_v31 = vadd.f32 %v1127_v21, %v3115_v52 }
  0xba   : > { %v538_v13 = vpop.f32.mrf.mxu0  ;;  %v1083_v14 = vmul.f32 %v987_v8, %v625_v62 }
  0xbb   : > { %v938_v16 = vmul.f32 0.044715, %v3125_v11  ;;  %v3129_v17 = vadd.f32 %v538_v13, %v3109_v42  ;;  %v627_v18 = vpop.f32.mrf.mxu1  ;;  %v1178_v19 = vadd.f32 %v1082_v12, %v536_v58  ;;  %v1319_v49 = vmul.f32 0.7978846, %v1223_v31 }
  0xbc   : > { %v3133_v22 = vadd.f32 %v627_v18, %v3101_v39  ;;  %v1179_v23 = vadd.f32 %v1083_v14, %v625_v62 }
  0xbd   : > { %v1034_v24 = vmul.f32 %v938_v16, %v3125_v11  ;;  %v893_v25 = vmul.f32 0.044715, %v3129_v17  ;;  %715 = vmatmul.bf16.gmra.mxu2 %v2989_v59  ;;  %v1274_v26 = vmul.f32 0.7978846, %v1178_v19  ;;  %v2611_v29 = vpop.eup %2610 }
  0xbe   : > { %v894_v27 = vmul.f32 0.044715, %v3133_v22  ;;  %v1275_v28 = vmul.f32 0.7978846, %v1179_v23  ;;  %v2613_v32 = vpop.eup %2612  ;;  %v1463_v38 = vadd.f32 1.0, %v2611_v29 }
  0xbf   : > { %2614 = vtanh.f32 %v1274_v26  ;;  %v989_v30 = vmul.f32 %v893_v25, %v3129_v17  ;;  %v1130_v36 = vmul.f32 %v1034_v24, %v3125_v11  ;;  %v1464_v47 = vadd.f32 1.0, %v2613_v32 }
  0xc0   : > { %v578_v33 = vpop.f32.mrf.mxu2  ;;  %2616 = vtanh.f32 %v1275_v28  ;;  %v990_v34 = vmul.f32 %v894_v27, %v3133_v22  ;;  %v1559_v53 = vmul.f32 %v1463_v38, %v791_v37 }
  0xc1   : > { %v1085_v35 = vmul.f32 %v989_v30, %v3129_v17  ;;  %v1226_v44 = vadd.f32 %v1130_v36, %v3125_v11  ;;  %v1560_v3 = vmul.f32 %v1464_v47, %v792_v40  ;;  %2618 = vtanh.f32 %v1319_v49 }
  0xc2   : > { %v540_v59 = vpop.f32.mrf.mxu0  ;;  %v1086_v41 = vmul.f32 %v990_v34, %v3133_v22  ;;  %v3163_v13 = vadd.f32 %v578_v33, %v3109_v42  ;;  %v797_v40 = vmul.f32 0.5, %v3129_v17  ;;  %v798_v47 = vmul.f32 0.5, %v3133_v22 }
  0xc3   : > { %v3146_v43 = vadd.f32 %v540_v59, %v3109_v42  ;;  %v629_v45 = vpop.f32.mrf.mxu1  ;;  %v1181_v48 = vadd.f32 %v1085_v35, %v3129_v17  ;;  %v1322_v8 = vmul.f32 0.7978846, %v1226_v44  ;;  %v839_v59 = vmul.f32 0.5, %v3115_v52 }
  0xc4   : > { %v3150_v50 = vadd.f32 %v629_v45, %v3101_v39  ;;  %v1182_v54 = vadd.f32 %v1086_v41, %v3133_v22  ;;  %v941_v32 = vmul.f32 0.044715, %v3163_v13  ;;  %v842_v41 = vmul.f32 0.5, %v3125_v11 }
  0xc5   : > { %v2615_v55 = vpop.eup %2614  ;;  %v896_v56 = vmul.f32 0.044715, %v3146_v43  ;;  %v1277_v57 = vmul.f32 0.7978846, %v1181_v48  ;;  %v800_v11 = vmul.f32 0.5, %v3146_v43 }
  0xc6   : > { %v2617_v61 = vpop.eup %2616  ;;  %v1466_v63 = vadd.f32 1.0, %v2615_v55  ;;  %v897_v1 = vmul.f32 0.044715, %v3150_v50  ;;  %v1278_v2 = vmul.f32 0.7978846, %v1182_v54  ;;  %v801_v60 = vmul.f32 0.5, %v3150_v50 }
  0xc7   : > { %v1467_v58 = vadd.f32 1.0, %v2617_v61  ;;  %v992_v4 = vmul.f32 %v896_v56, %v3146_v43  ;;  %2620 = vtanh.f32 %v1277_v57  ;;  %v2619_v27 = vpop.eup %2618 }
  0xc8   : > { %v580_v62 = vpop.f32.mrf.mxu2  ;;  %v1562_v6 = vmul.f32 %v1466_v63, %v794_v51  ;;  %v993_v7 = vmul.f32 %v897_v1, %v3150_v50  ;;  %2622 = vtanh.f32 %v1278_v2  ;;  %v1511_v49 = vadd.f32 1.0, %v2619_v27 }
  0xc9   : > { %v1563_v9 = vmul.f32 %v1467_v58, %v795_v46  ;;  %v1088_v12 = vmul.f32 %v992_v4, %v3146_v43  ;;  %2624 = vtanh.f32 %v1322_v8  ;;  %v3175_v28 = vadd.f32 %v580_v62, %v3109_v42  ;;  %v3209_v4 = vpop.f32.mrf.mxu3 }
  0xca   : > { %v543_v14 = vpop.f32.mrf.mxu0  ;;  %v1655_v16 = vpack.c.bf16 %v1562_v6, %v1559_v53  ;;  %v1089_v18 = vmul.f32 %v993_v7, %v3150_v50  ;;  %v1037_v51 = vmul.f32 %v941_v32, %v3163_v13 }
  0xcb   : > { %v3167_v19 = vadd.f32 %v543_v14, %v3109_v42  ;;  %v632_v21 = vpop.f32.mrf.mxu1  ;;  %v1656_v23 = vpack.c.bf16 %v1563_v9, %v1560_v3  ;;  %v1184_v24 = vadd.f32 %v1088_v12, %v3146_v43  ;;  %v944_v45 = vmul.f32 0.044715, %v3175_v28 }
  0xcc   : > { %v3171_v25 = vadd.f32 %v632_v21, %v3101_v39  ;;  %1907 = vmatmul.bf16.vlgmr.msrb.gmra.mxu3 %v1655_v16  ;;  %v1185_v26 = vadd.f32 %v1089_v18, %v3150_v50  ;;  %v3207_v3 = vmul.f32 %v1511_v49, %v839_v59  ;;  %v2582_v21 = vld [vmem:[%s4152_s3 + $0xa8] sm:$0xff] }
  0xcd   : > { %v899_v29 = vmul.f32 0.044715, %v3167_v19  ;;  %1996 = vmatmul.bf16.vlgmr.msrb.gmra.mxu0 %v1656_v23  ;;  %720 = vmatmul.bf16.gmra.mxu2 %v3001_v0  ;;  %v1280_v30 = vmul.f32 0.7978846, %v1184_v24  ;;  %v2621_v31 = vpop.eup %2620  ;;  %v1040_v1 = vmul.f32 %v944_v45, %v3175_v28  ;;  %v1133_v24 = vmul.f32 %v1037_v51, %v3163_v13 }
  0xce   : > { %v900_v33 = vmul.f32 0.044715, %v3171_v25  ;;  %v1281_v34 = vmul.f32 0.7978846, %v1185_v26  ;;  %v2623_v35 = vpop.eup %2622  ;;  %v1469_v54 = vadd.f32 1.0, %v2621_v31  ;;  %2079 = vmatpush.bf16.msrb.mxu1 %v2582_v21 }
  0xcf   : > { %2626 = vtanh.f32 %v1280_v30  ;;  %v995_v36 = vmul.f32 %v899_v29, %v3167_v19  ;;  %v2625_v37 = vpop.eup %2624  ;;  %v1470_v56 = vadd.f32 1.0, %v2623_v35  ;;  %v1136_v29 = vmul.f32 %v1040_v1, %v3175_v28 }
  0xd0   : > { %v3183_v38 = vpop.f32.mrf.mxu2  ;;  %2628 = vtanh.f32 %v1281_v34  ;;  %v996_v0 = vmul.f32 %v900_v33, %v3171_v25  ;;  %v1514_v55 = vadd.f32 1.0, %v2625_v37  ;;  %v1565_v6 = vmul.f32 %v1469_v54, %v797_v40 }
  0xd1   : > { %v1091_v48 = vmul.f32 %v995_v36, %v3167_v19  ;;  %v1566_v9 = vmul.f32 %v1470_v56, %v798_v47  ;;  %v1229_v40 = vadd.f32 %v1133_v24, %v3163_v13  ;;  %v1232_v45 = vadd.f32 %v1136_v29, %v3175_v28 }
  0xd2   : > { %v545_v52 = vpop.f32.mrf.mxu0  ;;  %v1092_v44 = vmul.f32 %v996_v0, %v3171_v25  ;;  %v3203_v63 = vmul.f32 %v1514_v55, %v842_v41  ;;  %v3237_v47 = vadd.f32 %v3183_v38, %v3109_v42  ;;  %v803_v38 = vmul.f32 0.5, %v3167_v19 }
  0xd3   : > { %v3194_v17 = vadd.f32 %v545_v52, %v3109_v42  ;;  %v634_v46 = vpop.f32.mrf.mxu1  ;;  %v1187_v57 = vadd.f32 %v1091_v48, %v3167_v19  ;;  %v804_v1 = vmul.f32 0.5, %v3171_v25 }
  0xd4   : > { %v3199_v22 = vadd.f32 %v634_v46, %v3101_v39  ;;  %v1188_v61 = vadd.f32 %v1092_v44, %v3171_v25  ;;  %v3241_v44 = vpop.f32.mrf.mxu3  ;;  %v1325_v46 = vmul.f32 0.7978846, %v1229_v40 }
  0xd5   : > { %v2627_v53 = vpop.eup %2626  ;;  %v902_v2 = vmul.f32 0.044715, %v3194_v17  ;;  %v1283_v58 = vmul.f32 0.7978846, %v1187_v57  ;;  %v1328_v57 = vmul.f32 0.7978846, %v1232_v45 }
  0xd6   : > { %v2629_v43 = vpop.eup %2628  ;;  %v1472_v62 = vadd.f32 1.0, %v2627_v53  ;;  %v903_v7 = vmul.f32 0.044715, %v3199_v22  ;;  %v1284_v50 = vmul.f32 0.7978846, %v1188_v61 }
  0xd7   : > { %v1473_v8 = vadd.f32 1.0, %v2629_v43  ;;  %v998_v12 = vmul.f32 %v902_v2, %v3194_v17  ;;  %2630 = vtanh.f32 %v1283_v58 }
  0xd8   : > { %v585_v14 = vpop.f32.mrf.mxu2  ;;  %v1568_v16 = vmul.f32 %v1472_v62, %v800_v11  ;;  %v999_v18 = vmul.f32 %v903_v7, %v3199_v22  ;;  %2632 = vtanh.f32 %v1284_v50  ;;  %v806_v62 = vmul.f32 0.5, %v3194_v17 }
  0xd9   : > { %v1569_v26 = vmul.f32 %v1473_v8, %v801_v60  ;;  %v1094_v27 = vmul.f32 %v998_v12, %v3194_v17  ;;  %v3247_v11 = vadd.f32 %v585_v14, %v3109_v42  ;;  %v947_v60 = vmul.f32 0.044715, %v3237_v47 }
  0xda   : > { %v548_v30 = vpop.f32.mrf.mxu0  ;;  %v1658_v31 = vpack.c.bf16 %v1568_v16, %v1565_v6  ;;  %v1095_v32 = vmul.f32 %v999_v18, %v3199_v22  ;;  %v807_v50 = vmul.f32 0.5, %v3199_v22 }
  0xdb   : > { %v3224_v33 = vadd.f32 %v548_v30, %v3109_v42  ;;  %v637_v34 = vpop.f32.mrf.mxu1  ;;  %v1659_v35 = vpack.c.bf16 %v1569_v26, %v1566_v9  ;;  %v1190_v36 = vadd.f32 %v1094_v27, %v3194_v17  ;;  %v950_v9 = vmul.f32 0.044715, %v3247_v11 }
  0xdc   : > { %v3228_v59 = vadd.f32 %v637_v34, %v3101_v39  ;;  %1912 = vmatmul.bf16.gmra.mxu3 %v1658_v31  ;;  %v1191_v37 = vadd.f32 %v1095_v32, %v3199_v22  ;;  %v1043_v26 = vmul.f32 %v947_v60, %v3237_v47  ;;  %v2581_v34 = vld [vmem:[%s4152_s3 + $0xa0] sm:$0xff] }
  0xdd   : > { %v905_v0 = vmul.f32 0.044715, %v3224_v33  ;;  %2001 = vmatmul.bf16.gmra.mxu0 %v1659_v35  ;;  %725 = vmatmul.bf16.gmra.mxu2 %v3013_v5  ;;  %v1286_v41 = vmul.f32 0.7978846, %v1190_v36  ;;  %v2631_v51 = vpop.eup %2630  ;;  %v1046_v35 = vmul.f32 %v950_v9, %v3247_v11  ;;  %v809_v9 = vmul.f32 0.5, %v3224_v33 }
  0xde   : > { %v906_v48 = vmul.f32 0.044715, %v3228_v59  ;;  %v1287_v49 = vmul.f32 0.7978846, %v1191_v37  ;;  %v2633_v54 = vpop.eup %2632  ;;  %v1475_v53 = vadd.f32 1.0, %v2631_v51  ;;  %2080 = vmatpush.bf16.msrb.mxu1 %v2581_v34 }
  0xdf   : > { %2634 = vtanh.f32 %v1286_v41  ;;  %v1001_v52 = vmul.f32 %v905_v0, %v3224_v33  ;;  %v1476_v6 = vadd.f32 1.0, %v2633_v54  ;;  %v3277_v0 = vpop.f32.mrf.mxu3 }
  0xe0   : > { %v3243_v55 = vpop.f32.mrf.mxu2  ;;  %2636 = vtanh.f32 %v1287_v49  ;;  %v1002_v5 = vmul.f32 %v906_v48, %v3228_v59  ;;  %v1571_v18 = vmul.f32 %v1475_v53, %v803_v38 }
  0xe1   : > { %v1097_v56 = vmul.f32 %v1001_v52, %v3224_v33  ;;  %2638 = vtanh.f32 %v1325_v46  ;;  %v1572_v22 = vmul.f32 %v1476_v6, %v804_v1  ;;  %v1139_v46 = vmul.f32 %v1043_v26, %v3237_v47 }
  0xe2   : > { %v550_v61 = vpop.f32.mrf.mxu0  ;;  %v1098_v2 = vmul.f32 %v1002_v5, %v3228_v59  ;;  %2640 = vtanh.f32 %v1328_v57 }
  0xe3   : > { %v3255_v58 = vadd.f32 %v550_v61, %v3109_v42  ;;  %v639_v43 = vpop.f32.mrf.mxu1  ;;  %v1193_v19 = vadd.f32 %v1097_v56, %v3224_v33  ;;  %v1142_v61 = vmul.f32 %v1046_v35, %v3247_v11 }
  0xe4   : > { %v3260_v7 = vadd.f32 %v639_v43, %v3101_v39  ;;  %v1194_v8 = vadd.f32 %v1098_v2, %v3228_v59 }
  0xe5   : > { %v2635_v25 = vpop.eup %2634  ;;  %v908_v12 = vmul.f32 0.044715, %v3255_v58  ;;  %v1289_v14 = vmul.f32 0.7978846, %v1193_v19  ;;  %v845_v19 = vmul.f32 0.5, %v3163_v13  ;;  %v1238_v13 = vadd.f32 %v1142_v61, %v3247_v11  ;;  %v2580_v61 = vld [vmem:[%s4152_s3 + $0x98] sm:$0xff] }
  0xe6   : > { %v2637_v16 = vpop.eup %2636  ;;  %v1478_v17 = vadd.f32 1.0, %v2635_v25  ;;  %v909_v21 = vmul.f32 0.044715, %v3260_v7  ;;  %v1290_v24 = vmul.f32 0.7978846, %v1194_v8  ;;  %2081 = vmatpush.bf16.msrb.mxu1 %v2580_v61 }
  0xe7   : > { %v1479_v27 = vadd.f32 1.0, %v2637_v16  ;;  %v1004_v29 = vmul.f32 %v908_v12, %v3255_v58  ;;  %2642 = vtanh.f32 %v1289_v14  ;;  %v2639_v40 = vpop.eup %2638  ;;  %v848_v12 = vmul.f32 0.5, %v3175_v28 }
  0xe8   : > { %v3269_v30 = vpop.f32.mrf.mxu2  ;;  %v1574_v31 = vmul.f32 %v1478_v17, %v806_v62  ;;  %v1005_v32 = vmul.f32 %v909_v21, %v3260_v7  ;;  %2644 = vtanh.f32 %v1290_v24  ;;  %v2641_v49 = vpop.eup %2640  ;;  %v1517_v2 = vadd.f32 1.0, %v2639_v40 }
  0xe9   : > { %v1575_v36 = vmul.f32 %v1479_v27, %v807_v50  ;;  %v1100_v37 = vmul.f32 %v1004_v29, %v3255_v58  ;;  %v1520_v43 = vadd.f32 1.0, %v2641_v49  ;;  %v1235_v50 = vadd.f32 %v1139_v46, %v3237_v47  ;;  %v669_v29 = vpop.f32.mrf.mxu3 }
  0xea   : > { %v553_v41 = vpop.f32.mrf.mxu0  ;;  %v1661_v45 = vpack.c.bf16 %v1574_v31, %v1571_v18  ;;  %v1101_v48 = vmul.f32 %v1005_v32, %v3260_v7  ;;  %v812_v14 = vmul.f32 0.5, %v3255_v58  ;;  %v810_v16 = vmul.f32 0.5, %v3228_v59 }
  0xeb   : > { %v3281_v51 = vadd.f32 %v553_v41, %v3109_v42  ;;  %v642_v52 = vpop.f32.mrf.mxu1  ;;  %v1662_v54 = vpack.c.bf16 %v1575_v36, %v1572_v22  ;;  %v1196_v5 = vadd.f32 %v1100_v37, %v3255_v58  ;;  %v3306_v26 = vmul.f32 %v1517_v2, %v845_v19 }
  0xec   : > { %v3286_v38 = vadd.f32 %v642_v52, %v3101_v39  ;;  %1917 = vmatmul.bf16.gmra.mxu3 %v1661_v45  ;;  %v1197_v56 = vadd.f32 %v1101_v48, %v3260_v7  ;;  %v3308_v27 = vmul.f32 %v1520_v43, %v848_v12  ;;  %v1331_v59 = vmul.f32 0.7978846, %v1235_v50 }
  0xed   : > { %v911_v57 = vmul.f32 0.044715, %v3281_v51  ;;  %2006 = vmatmul.bf16.gmra.mxu0 %v1662_v54  ;;  %730 = vmatmul.bf16.gmra.mxu2 %v3025_v10  ;;  %v1292_v60 = vmul.f32 0.7978846, %v1196_v5  ;;  %v2643_v62 = vpop.eup %2642  ;;  %4159 = vst [vmem:[#allocation2_spill] sm:$0xff] %v3306_v26  ;;  %v813_v32 = vmul.f32 0.5, %v3260_v7  ;;  %v3337_v43 = vadd.f32 %v3241_v44, %v3101_v39 }
  0xee   : > { %v912_v53 = vmul.f32 0.044715, %v3286_v38  ;;  %v1293_v1 = vmul.f32 0.7978846, %v1197_v56  ;;  %v2645_v8 = vpop.eup %2644  ;;  %v1481_v21 = vadd.f32 1.0, %v2643_v62  ;;  %4160 = vst [vmem:[#allocation3_spill] sm:$0xff] %v3308_v27 }
  0xef   : > { %v1007_v6 = vmul.f32 %v911_v57, %v3281_v51  ;;  %2646 = vtanh.f32 %v1292_v60  ;;  %v1482_v22 = vadd.f32 1.0, %v2645_v8  ;;  %v1334_v41 = vmul.f32 0.7978846, %v1238_v13 }
  0xf0   : > { %v1008_v25 = vmul.f32 %v912_v53, %v3286_v38  ;;  %v3297_v10 = vpop.f32.mrf.mxu2  ;;  %2648 = vtanh.f32 %v1293_v1  ;;  %v1577_v52 = vmul.f32 %v1481_v21, %v809_v9  ;;  %v3332_v53 = vadd.f32 %v3209_v4, %v3101_v39 }
  0xf1   : > { %v1103_v17 = vmul.f32 %v1007_v6, %v3281_v51  ;;  %v1578_v7 = vmul.f32 %v1482_v22, %v810_v16  ;;  %2650 = vtanh.f32 %v1331_v59  ;;  %v3356_v21 = vpop.f32.mrf.mxu3  ;;  %v3364_v59 = vadd.f32 %v669_v29, %v3101_v39 }
  0xf2   : > { %v555_v18 = vpop.f32.mrf.mxu0  ;;  %v1104_v24 = vmul.f32 %v1008_v25, %v3286_v38 }
  0xf3   : > { %v3311_v33 = vadd.f32 %v555_v18, %v3109_v42  ;;  %v644_v28 = vpop.f32.mrf.mxu1  ;;  %v1199_v58 = vadd.f32 %v1103_v17, %v3281_v51  ;;  %v3354_v18 = vmul.f32 0.044715, %v3337_v43 }
  0xf4   : > { %v3315_v31 = vadd.f32 %v644_v28, %v3101_v39  ;;  %v1200_v34 = vadd.f32 %v1104_v24, %v3286_v38 }
  0xf5   : > { %v2647_v36 = vpop.eup %2646  ;;  %v914_v37 = vmul.f32 0.044715, %v3311_v33  ;;  %v1295_v40 = vmul.f32 0.7978846, %v1199_v58  ;;  %v3361_v58 = vadd.f32 %v3277_v0, %v3101_v39  ;;  %v815_v0 = vmul.f32 0.5, %v3281_v51 }
  0xf6   : > { %v2649_v45 = vpop.eup %2648  ;;  %v915_v48 = vmul.f32 0.044715, %v3315_v31  ;;  %v1484_v49 = vadd.f32 1.0, %v2647_v36  ;;  %v1296_v54 = vmul.f32 0.7978846, %v1200_v34  ;;  %v3369_v34 = vadd.f32 %v3243_v55, %v3109_v42 }
  0xf7   : > { %v1010_v5 = vmul.f32 %v914_v37, %v3311_v33  ;;  %v1485_v46 = vadd.f32 1.0, %v2649_v45  ;;  %2652 = vtanh.f32 %v1295_v40  ;;  %v2651_v12 = vpop.eup %2650  ;;  %v851_v40 = vmul.f32 0.5, %v3237_v47 }
  0xf8   : > { %v1011_v56 = vmul.f32 %v915_v48, %v3315_v31  ;;  %v3325_v57 = vpop.f32.mrf.mxu2  ;;  %v1580_v60 = vmul.f32 %v1484_v49, %v812_v14  ;;  %2654 = vtanh.f32 %v1296_v54  ;;  %v3349_v14 = vmul.f32 0.044715, %v3332_v53 }
  0xf9   : > { %v1581_v1 = vmul.f32 %v1485_v46, %v813_v32  ;;  %v1106_v2 = vmul.f32 %v1010_v5, %v3311_v33  ;;  %2656 = vtanh.f32 %v1334_v41  ;;  %v854_v45 = vmul.f32 0.5, %v3247_v11 }
  0xfa   : > { %v558_v62 = vpop.f32.mrf.mxu0  ;;  %v1664_v6 = vpack.c.bf16 %v1580_v60, %v1577_v52  ;;  %v1107_v19 = vmul.f32 %v1011_v56, %v3315_v31  ;;  %v3380_v48 = vadd.f32 %v3269_v30, %v3109_v42  ;;  %v1523_v52 = vadd.f32 1.0, %v2651_v12 }
  0xfb   : > { %v3341_v50 = vadd.f32 %v558_v62, %v3109_v42  ;;  %v647_v8 = vpop.f32.mrf.mxu1  ;;  %v1665_v4 = vpack.c.bf16 %v1581_v1, %v1578_v7  ;;  %v1202_v25 = vadd.f32 %v1106_v2, %v3311_v33  ;;  %v816_v51 = vmul.f32 0.5, %v3286_v38 }
  0xfc   : > { %v3345_v9 = vadd.f32 %v647_v8, %v3101_v39  ;;  %1922 = vmatmul.bf16.gmra.mxu3 %v1664_v6  ;;  %v1203_v44 = vadd.f32 %v1107_v19, %v3315_v31  ;;  %v818_v30 = vmul.f32 0.5, %v3311_v33  ;;  %v819_v62 = vmul.f32 0.5, %v3315_v31 }
  0xfd   : > { %v917_v16 = vmul.f32 0.044715, %v3341_v50  ;;  %2011 = vmatmul.bf16.gmra.mxu0 %v1665_v4  ;;  %735 = vmatmul.bf16.gmra.mxu2 %v3037_v15  ;;  %v1298_v17 = vmul.f32 0.7978846, %v1202_v25  ;;  %v2653_v13 = vpop.eup %2652  ;;  %v3398_v25 = vmul.f32 %v1523_v52, %v851_v40  ;;  %v942_v33 = vmul.f32 0.044715, %v3361_v58 }
  0xfe   : > { %v918_v24 = vmul.f32 0.044715, %v3345_v9  ;;  %v1299_v28 = vmul.f32 0.7978846, %v1203_v44  ;;  %v2655_v22 = vpop.eup %2654  ;;  %v1487_v41 = vadd.f32 1.0, %v2653_v13  ;;  %v674_v13 = vpop.f32.mrf.mxu3 }
  0xff   : > { %v1013_v15 = vmul.f32 %v917_v16, %v3341_v50  ;;  %2658 = vtanh.f32 %v1298_v17  ;;  %v2657_v32 = vpop.eup %2656  ;;  %v1488_v46 = vadd.f32 1.0, %v2655_v22  ;;  %4162 = vst [vmem:[#allocation5_spill] sm:$0xff] %v3398_v25  ;;  %v956_v17 = vmul.f32 0.044715, %v3380_v48  ;;  %v2579_v22 = vld [vmem:[%s4152_s3 + $0x90] sm:$0xff] }
 0x100   : > { %v1014_v36 = vmul.f32 %v918_v24, %v3345_v9  ;;  %v3372_v37 = vpop.f32.mrf.mxu2  ;;  %2660 = vtanh.f32 %v1299_v28  ;;  %v1526_v54 = vadd.f32 1.0, %v2657_v32  ;;  %v1583_v2 = vmul.f32 %v1487_v41, %v815_v0  ;;  %2082 = vmatpush.bf16.msrb.mxu1 %v2579_v22 }
 0x101   : > { %v1109_v29 = vmul.f32 %v1013_v15, %v3341_v50  ;;  %v1584_v16 = vmul.f32 %v1488_v46, %v816_v51  ;;  %v953_v32 = vmul.f32 0.044715, %v3369_v34  ;;  %v945_v0 = vmul.f32 0.044715, %v3364_v59 }
 0x102   : > { %v560_v55 = vpop.f32.mrf.mxu0  ;;  %v1110_v49 = vmul.f32 %v1014_v36, %v3345_v9  ;;  %v3393_v60 = vmul.f32 %v1526_v54, %v854_v45  ;;  %v1052_v51 = vmul.f32 %v956_v17, %v3380_v48  ;;  %v3425_v46 = vadd.f32 %v674_v13, %v3101_v39 }
 0x103   : > { %v3384_v5 = vadd.f32 %v560_v55, %v3109_v42  ;;  %v649_v47 = vpop.f32.mrf.mxu1  ;;  %v1205_v7 = vadd.f32 %v1109_v29, %v3341_v50  ;;  %v3417_v55 = vadd.f32 %v3356_v21, %v3101_v39  ;;  %v1049_v21 = vmul.f32 %v953_v32, %v3369_v34 }
 0x104   : > { %v3389_v11 = vadd.f32 %v649_v47, %v3101_v39  ;;  %v1206_v56 = vadd.f32 %v1110_v49, %v3345_v9  ;;  %4161 = vst [vmem:[#allocation4_spill] sm:$0xff] %v3393_v60  ;;  %v821_v32 = vmul.f32 0.5, %v3341_v50 }
 0x105   : > { %v2659_v61 = vpop.eup %2658  ;;  %v920_v1 = vmul.f32 0.044715, %v3384_v5  ;;  %v1301_v6 = vmul.f32 0.7978846, %v1205_v7  ;;  %v1145_v13 = vmul.f32 %v1049_v21, %v3369_v34 }
 0x106   : > { %v2661_v38 = vpop.eup %2660  ;;  %v921_v19 = vmul.f32 0.044715, %v3389_v11  ;;  %v1490_v8 = vadd.f32 1.0, %v2659_v61  ;;  %v1302_v4 = vmul.f32 0.7978846, %v1206_v56  ;;  %v3434_v56 = vadd.f32 %v3297_v10, %v3109_v42 }
 0x107   : > { %v1016_v44 = vmul.f32 %v920_v1, %v3384_v5  ;;  %v1491_v12 = vadd.f32 1.0, %v2661_v38  ;;  %2662 = vtanh.f32 %v1301_v6  ;;  %v3448_v10 = vmul.f32 %v942_v33, %v3361_v58 }
 0x108   : > { %v1017_v24 = vmul.f32 %v921_v19, %v3389_v11  ;;  %v3404_v31 = vpop.f32.mrf.mxu2  ;;  %v1586_v28 = vmul.f32 %v1490_v8, %v818_v30  ;;  %2664 = vtanh.f32 %v1302_v4  ;;  %v3451_v8 = vmul.f32 %v945_v0, %v3364_v59 }
 0x109   : > { %v1587_v36 = vmul.f32 %v1491_v12, %v819_v62  ;;  %v1112_v40 = vmul.f32 %v1016_v44, %v3384_v5  ;;  %v3444_v62 = vmul.f32 %v3354_v18, %v3337_v43  ;;  %v1148_v12 = vmul.f32 %v1052_v51, %v3380_v48 }
 0x10a   : > { %v563_v41 = vpop.f32.mrf.mxu0  ;;  %v1667_v29 = vpack.c.bf16 %v1586_v28, %v1583_v2  ;;  %v1113_v45 = vmul.f32 %v1017_v24, %v3389_v11  ;;  %v3440_v2 = vmul.f32 %v3349_v14, %v3332_v53  ;;  %v3455_v14 = vmul.f32 0.044715, %v3417_v55  ;;  %v3471_v28 = vpop.f32.mrf.mxu3 }
 0x10b   : > { %v3420_v49 = vadd.f32 %v563_v41, %v3109_v42  ;;  %v652_v52 = vpop.f32.mrf.mxu1  ;;  %v1668_v54 = vpack.c.bf16 %v1587_v36, %v1584_v16  ;;  %v1208_v47 = vadd.f32 %v1112_v40, %v3384_v5  ;;  %v959_v33 = vmul.f32 0.044715, %v3434_v56 }
 0x10c   : > { %v3428_v7 = vadd.f32 %v652_v52, %v3101_v39  ;;  %1927 = vmatmul.bf16.gmra.mxu3 %v1667_v29  ;;  %v1209_v30 = vadd.f32 %v1113_v45, %v3389_v11  ;;  %v3463_v16 = vmul.f32 0.044715, %v3425_v46  ;;  %v3469_v24 = vadd.f32 %v3325_v57, %v3109_v42 }
 0x10d   : > { %v923_v61 = vmul.f32 0.044715, %v3420_v49  ;;  %2016 = vmatmul.bf16.gmra.mxu0 %v1668_v54  ;;  %740 = vmatmul.bf16.gmra.mxu2 %v3049_v20  ;;  %v1304_v1 = vmul.f32 0.7978846, %v1208_v47  ;;  %v2663_v19 = vpop.eup %2662  ;;  %v822_v29 = vmul.f32 0.5, %v3345_v9  ;;  %v824_v54 = vmul.f32 0.5, %v3384_v5 }
 0x10e   : > { %v924_v6 = vmul.f32 0.044715, %v3428_v7  ;;  %v1305_v38 = vmul.f32 0.7978846, %v1209_v30  ;;  %v2665_v4 = vpop.eup %2664  ;;  %v1493_v36 = vadd.f32 1.0, %v2663_v19  ;;  %v1244_v50 = vadd.f32 %v1148_v12, %v3380_v48  ;;  %v2578_v9 = vld [vmem:[%s4152_s3 + $0x88] sm:$0xff] }
 0x10f   : > { %v1019_v20 = vmul.f32 %v923_v61, %v3420_v49  ;;  %2666 = vtanh.f32 %v1304_v1  ;;  %v1494_v45 = vadd.f32 1.0, %v2665_v4  ;;  %v825_v21 = vmul.f32 0.5, %v3389_v11  ;;  %2083 = vmatpush.bf16.msrb.mxu1 %v2578_v9 }
 0x110   : > { %v1020_v18 = vmul.f32 %v924_v6, %v3428_v7  ;;  %v3458_v44 = vpop.f32.mrf.mxu2  ;;  %2668 = vtanh.f32 %v1305_v38  ;;  %v1241_v1 = vadd.f32 %v1145_v13, %v3369_v34  ;;  %v1589_v19 = vmul.f32 %v1493_v36, %v821_v32 }
 0x111   : > { %v1115_v17 = vmul.f32 %v1019_v20, %v3420_v49  ;;  %v3495_v4 = vadd.f32 %v3372_v37, %v3109_v42  ;;  %v1590_v12 = vmul.f32 %v1494_v45, %v822_v29  ;;  %v1340_v32 = vmul.f32 0.7978846, %v1244_v50 }
 0x112   : > { %v565_v22 = vpop.f32.mrf.mxu0  ;;  %v1116_v40 = vmul.f32 %v1020_v18, %v3428_v7  ;;  %v962_v36 = vmul.f32 0.044715, %v3469_v24 }
 0x113   : > { %v3476_v0 = vadd.f32 %v565_v22, %v3109_v42  ;;  %v654_v41 = vpop.f32.mrf.mxu1  ;;  %v1211_v52 = vadd.f32 %v1115_v17, %v3420_v49  ;;  %v3500_v17 = vadd.f32 %v3404_v31, %v3109_v42  ;;  %v1337_v31 = vmul.f32 0.7978846, %v1241_v1 }
 0x114   : > { %v3481_v57 = vadd.f32 %v654_v41, %v3101_v39  ;;  %v1212_v47 = vadd.f32 %v1116_v40, %v3428_v7  ;;  %v965_v45 = vmul.f32 0.044715, %v3495_v4  ;;  %v1055_v1 = vmul.f32 %v959_v33, %v3434_v56 }
 0x115   : > { %v2667_v51 = vpop.eup %2666  ;;  %v926_v30 = vmul.f32 0.044715, %v3476_v0  ;;  %v1307_v61 = vmul.f32 0.7978846, %v1211_v52  ;;  %v1058_v33 = vmul.f32 %v962_v36, %v3469_v24  ;;  %v828_v36 = vmul.f32 0.5, %v3428_v7 }
 0x116   : > { %v2669_v6 = vpop.eup %2668  ;;  %v927_v38 = vmul.f32 0.044715, %v3481_v57  ;;  %v1496_v5 = vadd.f32 1.0, %v2667_v51  ;;  %v1308_v20 = vmul.f32 0.7978846, %v1212_v47 }
 0x117   : > { %v1022_v18 = vmul.f32 %v926_v30, %v3476_v0  ;;  %v1497_v11 = vadd.f32 1.0, %v2669_v6  ;;  %2670 = vtanh.f32 %v1307_v61  ;;  %v968_v61 = vmul.f32 0.044715, %v3500_v17 }
 0x118   : > { %v1023_v13 = vmul.f32 %v927_v38, %v3481_v57  ;;  %v3503_v22 = vpop.f32.mrf.mxu2  ;;  %v1592_v40 = vmul.f32 %v1496_v5, %v824_v54  ;;  %2672 = vtanh.f32 %v1308_v20  ;;  %v2802_v5 = vld [vmem:[%s2968_s22 + $0x38] sm:$0xff]  ;;  %v3524_v20 = vmul.f32 0.5, %v3369_v34 }
 0x119   : > { %v1593_v41 = vmul.f32 %v1497_v11, %v825_v21  ;;  %v1118_v37 = vmul.f32 %v1022_v18, %v3476_v0  ;;  %v3513_v21 = vpop.f32.mrf.mxu3  ;;  %2674 = vtanh.f32 %v1340_v32  ;;  %v3528_v18 = vadd.f32 %v3458_v44, %v3109_v42 }
 0x11a   : > { %v568_v52 = vpop.f32.mrf.mxu0  ;;  %v1670_v47 = vpack.c.bf16 %v1592_v40, %v1589_v19  ;;  %v1119_v29 = vmul.f32 %v1023_v13, %v3481_v57  ;;  %4163 = vst [vmem:[#allocation6_spill] sm:$0xff] %v3513_v21  ;;  %2676 = vtanh.f32 %v1337_v31  ;;  %v860_v32 = vmul.f32 0.5, %v3380_v48 }
 0x11b   : > { %v3510_v51 = vadd.f32 %v568_v52, %v3109_v42  ;;  %v657_v54 = vpop.f32.mrf.mxu1  ;;  %v1671_v50 = vpack.c.bf16 %v1593_v41, %v1590_v12  ;;  %v1214_v30 = vadd.f32 %v1118_v37, %v3476_v0  ;;  %v3535_v34 = vmul.f32 %v965_v45, %v3495_v4 }
 0x11c   : > { %v3517_v9 = vadd.f32 %v657_v54, %v3101_v39  ;;  %1932 = vmatmul.bf16.gmra.mxu3 %v1670_v47  ;;  %v1215_v6 = vadd.f32 %v1119_v29, %v3481_v57  ;;  %v3538_v37 = vmul.f32 %v968_v61, %v3500_v17  ;;  %v827_v47 = vmul.f32 0.5, %v3420_v49  ;;  %v2803_v29 = vld [vmem:[%s4151_s2] sm:$0x7] }
 0x11d   : > { %v929_v38 = vmul.f32 0.044715, %v3510_v51  ;;  %2021 = vmatmul.bf16.gmra.mxu0 %v1671_v50  ;;  %745 = vmatmul.bf16.gmra.mxu2 %v2802_v5  ;;  %v1310_v19 = vmul.f32 0.7978846, %v1214_v30  ;;  %v2671_v13 = vpop.eup %2670  ;;  %v3546_v48 = vperm.slane %v2803_v29, 2 }
 0x11e   : > { %v930_v11 = vmul.f32 0.044715, %v3517_v9  ;;  %v1311_v12 = vmul.f32 0.7978846, %v1215_v6  ;;  %v2673_v41 = vpop.eup %2672  ;;  %v971_v54 = vmul.f32 0.044715, %v3528_v18  ;;  %v1151_v6 = vmul.f32 %v1055_v1, %v3434_v56 }
 0x11f   : > { %v1025_v40 = vmul.f32 %v929_v38, %v3510_v51  ;;  %2678 = vtanh.f32 %v1310_v19  ;;  %v2675_v45 = vpop.eup %2674  ;;  %v1499_v30 = vadd.f32 1.0, %v2671_v13  ;;  %v830_v38 = vmul.f32 0.5, %v3476_v0 }
 0x120   : > { %v1026_v44 = vmul.f32 %v930_v11, %v3517_v9  ;;  %v608_v52 = vpop.f32.mrf.mxu2  ;;  %2680 = vtanh.f32 %v1311_v12  ;;  %v1500_v5 = vadd.f32 1.0, %v2673_v41  ;;  %v2577_v11 = vld [vmem:[%s4152_s3 + $0x80] sm:$0xff]  ;;  %v2677_v12 = vpop.eup %2676  ;;  %v3568_v0 = vadd.f32 %v3503_v22, %v3109_v42 }
 0x121   : > { %v1121_v31 = vmul.f32 %v1025_v40, %v3510_v51  ;;  %v831_v40 = vmul.f32 0.5, %v3481_v57  ;;  %2084 = vmatpush.bf16.msrb.mxu1 %v2577_v11  ;;  %v3571_v35 = vpop.f32.mrf.mxu3  ;;  %v1595_v23 = vmul.f32 %v1499_v30, %v827_v47  ;;  %v1529_v26 = vadd.f32 1.0, %v2677_v12 }
 0x122   : > { %v570_v50 = vpop.f32.mrf.mxu0  ;;  %v1122_v61 = vmul.f32 %v1026_v44, %v3517_v9  ;;  %v1154_v44 = vmul.f32 %v1058_v33, %v3469_v24  ;;  %v1596_v60 = vmul.f32 %v1500_v5, %v828_v36  ;;  %v1131_v47 = vmul.f32 %v3444_v62, %v3337_v43 }
 0x123   : > { %v3553_v49 = vadd.f32 %v570_v50, %v3109_v42  ;;  %v659_v7 = vpop.f32.mrf.mxu1  ;;  %v1217_v19 = vadd.f32 %v1121_v31, %v3510_v51  ;;  %v1532_v50 = vadd.f32 1.0, %v2675_v45  ;;  %v1128_v45 = vmul.f32 %v3440_v2, %v3332_v53 }
 0x124   : > { %v3561_v13 = vadd.f32 %v659_v7, %v3101_v39  ;;  %v1218_v1 = vadd.f32 %v1122_v61, %v3517_v9  ;;  %v1247_v5 = vadd.f32 %v1151_v6, %v3434_v56  ;;  %v1227_v6 = vadd.f32 %v1131_v47, %v3337_v43 }
 0x125   : > { %v2679_v29 = vpop.eup %2678  ;;  %v932_v41 = vmul.f32 0.044715, %v3553_v49  ;;  %v1313_v31 = vmul.f32 0.7978846, %v1217_v19  ;;  %v3581_v30 = vmul.f32 %v1532_v50, %v860_v32  ;;  %v2804_v32 = vld [vmem:[%s2968_s22 + $0x40] sm:$0xff]  ;;  %v833_v50 = vmul.f32 0.5, %v3510_v51 }
 0x126   : > { %v2681_v15 = vpop.eup %2680  ;;  %v933_v7 = vmul.f32 0.044715, %v3561_v13  ;;  %v1502_v57 = vadd.f32 1.0, %v2679_v29  ;;  %v1314_v61 = vmul.f32 0.7978846, %v1218_v1  ;;  %v1067_v1 = vmul.f32 %v971_v54, %v3528_v18 }
 0x127   : > { %v1028_v33 = vmul.f32 %v932_v41, %v3553_v49  ;;  %v1503_v25 = vadd.f32 1.0, %v2681_v15  ;;  %2682 = vtanh.f32 %v1313_v31  ;;  %v1250_v41 = vadd.f32 %v1154_v44, %v3469_v24 }
 0x128   : > { %v1029_v22 = vmul.f32 %v933_v7, %v3561_v13  ;;  %v610_v27 = vpop.f32.mrf.mxu2  ;;  %v1598_v21 = vmul.f32 %v1502_v57, %v830_v38  ;;  %2684 = vtanh.f32 %v1314_v61  ;;  %v974_v38 = vmul.f32 0.044715, %v3568_v0 }
 0x129   : > { %v1599_v19 = vmul.f32 %v1503_v25, %v831_v40  ;;  %v1124_v11 = vmul.f32 %v1028_v33, %v3553_v49  ;;  %v3588_v25 = vmul.f32 %v1529_v26, %v3524_v20  ;;  %v3591_v40 = vadd.f32 %v608_v52, %v3109_v42  ;;  %v3610_v61 = vpop.f32.mrf.mxu3 }
 0x12a   : > { %v1673_v15 = vpack.c.bf16 %v1598_v21, %v1595_v23  ;;  %v1125_v36 = vmul.f32 %v1029_v22, %v3561_v13  ;;  %v1224_v23 = vadd.f32 %v1128_v45, %v3332_v53  ;;  %v3596_v21 = vmul.f32 0.5, %v3434_v56 }
 0x12b   : > { %v1674_v12 = vpack.c.bf16 %v1599_v19, %v1596_v60  ;;  %v1220_v2 = vadd.f32 %v1124_v11, %v3553_v49  ;;  %v1688_v26 = vpack.c.bf16 %v3581_v30, %v3588_v25  ;;  %v3603_v20 = vmul.f32 0.5, %v3469_v24 }
 0x12c   : > { %1937 = vmatmul.bf16.gmra.mxu3 %v1673_v15  ;;  %v1221_v62 = vadd.f32 %v1125_v36, %v3561_v13  ;;  %v1343_v56 = vmul.f32 0.7978846, %v1247_v5  ;;  %v1070_v31 = vmul.f32 %v974_v38, %v3568_v0  ;;  %v834_v7 = vmul.f32 0.5, %v3517_v9 }
 0x12d   : > { %2026 = vmatmul.bf16.gmra.mxu0 %v1674_v12  ;;  %750 = vmatmul.bf16.gmra.mxu2 %v2804_v32  ;;  %v1316_v60 = vmul.f32 0.7978846, %v1220_v2  ;;  %v2683_v52 = vpop.eup %2682  ;;  %v977_v33 = vmul.f32 0.044715, %v3591_v40  ;;  %v1320_v45 = vmul.f32 0.7978846, %v1224_v23  ;;  %v1157_v9 = vmul.f32 %v3535_v34, %v3495_v4 }
 0x12e   : > { %v1317_v29 = vmul.f32 0.7978846, %v1221_v62  ;;  %v2685_v57 = vpop.eup %2684  ;;  %v1346_v54 = vmul.f32 0.7978846, %v1250_v41  ;;  %v1505_v24 = vadd.f32 1.0, %v2683_v52  ;;  %v836_v51 = vmul.f32 0.5, %v3553_v49 }
 0x12f   : > { %2686 = vtanh.f32 %v1316_v60  ;;  %v1323_v44 = vmul.f32 0.7978846, %v1227_v6  ;;  %v1160_v11 = vmul.f32 %v3538_v37, %v3500_v17  ;;  %v3622_v47 = vadd.f32 %v610_v27, %v3109_v42 }
 0x130   : > { %v711_v22 = vpop.f32.mrf.mxu2  ;;  %2688 = vtanh.f32 %v1317_v29  ;;  %v837_v36 = vmul.f32 0.5, %v3561_v13  ;;  %v1506_v5 = vadd.f32 1.0, %v2685_v57  ;;  %v1253_v38 = vadd.f32 %v1157_v9, %v3495_v4 }
 0x131   : > { %v3614_v19 = vadd.f32 %v711_v22, %v3546_v48  ;;  %2690 = vtanh.f32 %v1343_v56  ;;  %v1256_v49 = vadd.f32 %v1160_v11, %v3500_v17  ;;  %v1163_v12 = vmul.f32 %v1067_v1, %v3528_v18 }
 0x132   : > { %2692 = vtanh.f32 %v1346_v54  ;;  %v1601_v62 = vmul.f32 %v1505_v24, %v833_v50  ;;  %v1166_v42 = vmul.f32 %v1070_v31, %v3568_v0  ;;  %v1349_v23 = vmul.f32 0.7978846, %v1253_v38 }
 0x133   : > { %v889_v15 = vmul.f32 0.044715, %v3614_v19  ;;  %2694 = vtanh.f32 %v1320_v45  ;;  %v1352_v32 = vmul.f32 0.7978846, %v1256_v49  ;;  %v1259_v13 = vadd.f32 %v1163_v12, %v3528_v18 }
 0x134   : > { %2696 = vtanh.f32 %v1323_v44  ;;  %v1602_v52 = vmul.f32 %v1506_v5, %v834_v7  ;;  %v1262_v1 = vadd.f32 %v1166_v42, %v3568_v0  ;;  %v980_v56 = vmul.f32 0.044715, %v3622_v47  ;;  %v3639_v7 = vpop.f32.mrf.mxu3  ;;  %v2805_v42 = vld [vmem:[%s2968_s22 + $0x48] sm:$0xff] }
 0x135   : > { %v2687_v2 = vpop.eup %2686  ;;  %v985_v34 = vmul.f32 %v889_v15, %v3614_v19  ;;  %2698 = vtanh.f32 %v1349_v23  ;;  %v1073_v9 = vmul.f32 %v977_v33, %v3591_v40  ;;  %v1355_v15 = vmul.f32 0.7978846, %v1259_v13 }
 0x136   : > { %v2689_v27 = vpop.eup %2688  ;;  %v1508_v37 = vadd.f32 1.0, %v2687_v2  ;;  %2700 = vtanh.f32 %v1352_v32  ;;  %v840_v49 = vmul.f32 0.5, %v3332_v53  ;;  %v1358_v12 = vmul.f32 0.7978846, %v1262_v1 }
 0x137   : > { %v2691_v60 = vpop.eup %2690  ;;  %v1509_v6 = vadd.f32 1.0, %v2689_v27  ;;  %v1081_v29 = vmul.f32 %v985_v34, %v3614_v19  ;;  %v843_v2 = vmul.f32 0.5, %v3337_v43  ;;  %v1134_v34 = vmul.f32 %v3448_v10, %v3361_v58 }
 0x138   : > { %v2693_v41 = vpop.eup %2692  ;;  %v713_v50 = vpop.f32.mrf.mxu2  ;;  %v1604_v57 = vmul.f32 %v1508_v37, %v836_v51  ;;  %v1535_v22 = vadd.f32 1.0, %v2691_v60  ;;  %v1137_v33 = vmul.f32 %v3451_v8, %v3364_v59  ;;  %v869_v10 = vmul.f32 0.5, %v3495_v4 }
 0x139   : > { %v3636_v31 = vadd.f32 %v713_v50, %v3546_v48  ;;  %v1605_v45 = vmul.f32 %v1509_v6, %v837_v36  ;;  %v1177_v54 = vadd.f32 %v1081_v29, %v3614_v19  ;;  %v1538_v24 = vadd.f32 1.0, %v2693_v41  ;;  %v2695_v44 = vpop.eup %2694 }
 0x13a   : > { %v1676_v11 = vpack.c.bf16 %v1604_v57, %v1601_v62  ;;  %v2697_v5 = vpop.eup %2696  ;;  %v1076_v36 = vmul.f32 %v980_v56, %v3622_v47  ;;  %v3653_v53 = vmul.f32 %v1535_v22, %v3596_v21  ;;  %v1230_v43 = vadd.f32 %v1134_v34, %v3361_v58 }
 0x13b   : > { %v892_v51 = vmul.f32 0.044715, %v3636_v31  ;;  %v1677_v38 = vpack.c.bf16 %v1605_v45, %v1602_v52  ;;  %v1273_v27 = vmul.f32 0.7978846, %v1177_v54  ;;  %v3656_v37 = vmul.f32 %v1538_v24, %v3603_v20  ;;  %v2699_v23 = vpop.eup %2698 }
 0x13c   : > { %1942 = vmatmul.bf16.gmra.mxu3 %v1676_v11  ;;  %2702 = vtanh.f32 %v1355_v15  ;;  %v1169_v8 = vmul.f32 %v1073_v9, %v3591_v40  ;;  %v1512_v32 = vadd.f32 1.0, %v2695_v44  ;;  %v2701_v21 = vpop.eup %2700  ;;  %v1515_v52 = vadd.f32 1.0, %v2697_v5  ;;  %v3674_v15 = vpop.f32.mrf.mxu3 }
 0x13d   : > { %v988_v62 = vmul.f32 %v892_v51, %v3636_v31  ;;  %2031 = vmatmul.bf16.gmra.mxu0 %v1677_v38  ;;  %755 = vmatmul.bf16.gmra.mxu2 %v2805_v42  ;;  %v1691_v60 = vpack.c.bf16 %v3656_v37, %v3653_v53  ;;  %2704 = vtanh.f32 %v1358_v12  ;;  %v1233_v20 = vadd.f32 %v1137_v33, %v3364_v59 }
 0x13e   : > { %v1541_v29 = vadd.f32 1.0, %v2699_v23  ;;  %v1265_v1 = vadd.f32 %v1169_v8, %v3591_v40  ;;  %2706 = vtanh.f32 %v1273_v27  ;;  %v1544_v56 = vadd.f32 1.0, %v2701_v21 }
 0x13f   : > { %v1084_v13 = vmul.f32 %v988_v62, %v3636_v31  ;;  %v1326_v50 = vmul.f32 0.7978846, %v1230_v43  ;;  %v872_v57 = vmul.f32 0.5, %v3500_v17  ;;  %v875_v22 = vmul.f32 0.5, %v3528_v18 }
 0x140   : > { %v716_v6 = vpop.f32.mrf.mxu2  ;;  %v878_v45 = vmul.f32 0.5, %v3568_v0  ;;  %v1608_v24 = vmul.f32 %v1512_v32, %v840_v49  ;;  %v1361_v9 = vmul.f32 0.7978846, %v1265_v1  ;;  %v1329_v5 = vmul.f32 0.7978846, %v1233_v20 }
 0x141   : > { %v3667_v4 = vadd.f32 %v716_v6, %v3546_v48  ;;  %v1180_v41 = vadd.f32 %v1084_v13, %v3636_v31  ;;  %v3676_v51 = vmul.f32 %v1541_v29, %v869_v10  ;;  %v3678_v38 = vmul.f32 %v1544_v56, %v872_v57  ;;  %v2806_v57 = vld [vmem:[%s2968_s22 + $0x50] sm:$0xff] }
 0x142   : > { %v2703_v11 = vpop.eup %2702  ;;  %v1172_v12 = vmul.f32 %v1076_v36, %v3622_v47  ;;  %v1611_v34 = vmul.f32 %v1515_v52, %v843_v2  ;;  %v1044_v27 = vmul.f32 %v3455_v14, %v3417_v55  ;;  %v1047_v8 = vmul.f32 %v3463_v16, %v3425_v46 }
 0x143   : > { %v895_v54 = vmul.f32 0.044715, %v3667_v4  ;;  %v1276_v44 = vmul.f32 0.7978846, %v1180_v41  ;;  %v2705_v17 = vpop.eup %2704  ;;  %v1547_v0 = vadd.f32 1.0, %v2703_v11  ;;  %v1694_v49 = vpack.c.bf16 %v3678_v38, %v3676_v51 }
 0x144   : > { %v1550_v33 = vadd.f32 1.0, %v2705_v17  ;;  %v1268_v62 = vadd.f32 %v1172_v12, %v3622_v47  ;;  %v2707_v42 = vpop.eup %2706  ;;  %v1680_v13 = vpack.c.bf16 %v1611_v34, %v1608_v24  ;;  %v4164_v1 = vpack.c.bf16 %v3203_v63, %v3207_v3  ;;  %v3714_v3 = vpop.f32.mrf.mxu3 }
 0x145   : > { %2708 = vtanh.f32 %v1276_v44  ;;  %v991_v18 = vmul.f32 %v895_v54, %v3667_v4  ;;  %v3688_v2 = vmul.f32 %v1547_v0, %v875_v22  ;;  %v1465_v21 = vadd.f32 1.0, %v2707_v42 }
 0x146   : > { %2710 = vtanh.f32 %v1326_v50  ;;  %v3690_v43 = vmul.f32 %v1550_v33, %v878_v45  ;;  %v1364_v10 = vmul.f32 0.7978846, %v1268_v62  ;;  %v793_v16 = vmul.f32 0.5, %v3614_v19 }
 0x147   : > { %v1087_v23 = vmul.f32 %v991_v18, %v3667_v4  ;;  %2712 = vtanh.f32 %v1361_v9  ;;  %v796_v41 = vmul.f32 0.5, %v3636_v31  ;;  %v1140_v54 = vmul.f32 %v1044_v27, %v3417_v55 }
 0x148   : > { %v718_v36 = vpop.f32.mrf.mxu2  ;;  %2714 = vtanh.f32 %v1329_v5  ;;  %v1697_v6 = vpack.c.bf16 %v3690_v43, %v3688_v2  ;;  %v1143_v24 = vmul.f32 %v1047_v8, %v3425_v46  ;;  %v3712_v63 = vadd.f32 %v3471_v28, %v3101_v39 }
 0x149   : > { %v3695_v32 = vadd.f32 %v718_v36, %v3546_v48  ;;  %v1183_v14 = vadd.f32 %v1087_v23, %v3667_v4  ;;  %2716 = vtanh.f32 %v1364_v10  ;;  %v1561_v19 = vmul.f32 %v1465_v21, %v793_v16 }
 0x14a   : > { %v846_v9 = vmul.f32 0.5, %v3361_v58  ;;  %v849_v11 = vmul.f32 0.5, %v3364_v59  ;;  %v1236_v12 = vadd.f32 %v1140_v54, %v3417_v55  ;;  %v1239_v33 = vadd.f32 %v1143_v24, %v3425_v46  ;;  %v4165_v58 = vld [vmem:[#allocation6_spill] sm:$0xff] }
 0x14b   : > { %v2709_v52 = vpop.eup %2708  ;;  %v898_v20 = vmul.f32 0.044715, %v3695_v32  ;;  %v1279_v45 = vmul.f32 0.7978846, %v1183_v14  ;;  %v3727_v59 = vadd.f32 %v4165_v58, %v3101_v39  ;;  %v881_v23 = vmul.f32 0.5, %v3591_v40 }
 0x14c   : > { %v2711_v29 = vpop.eup %2710  ;;  %1947 = vmatmul.bf16.gmra.mxu3 %v4164_v1  ;;  %v1468_v56 = vadd.f32 1.0, %v2709_v52  ;;  %v884_v36 = vmul.f32 0.5, %v3622_v47  ;;  %v1332_v14 = vmul.f32 0.7978846, %v1236_v12  ;;  %v1335_v21 = vmul.f32 0.7978846, %v1239_v33 }
 0x14d   : > { %v2713_v50 = vpop.eup %2712  ;;  %2036 = vmatmul.bf16.gmra.mxu0 %v1680_v13  ;;  %760 = vmatmul.bf16.gmra.mxu2 %v2806_v57  ;;  %v994_v22 = vmul.f32 %v898_v20, %v3695_v32  ;;  %v1518_v0 = vadd.f32 1.0, %v2711_v29  ;;  %2718 = vtanh.f32 %v1279_v45  ;;  %v957_v40 = vmul.f32 0.044715, %v3727_v59  ;;  %v3742_v57 = vpop.f32.mrf.mxu3  ;;  %v4167_v12 = vld [vmem:[#allocation2_spill] sm:$0xff] }
 0x14e   : > { %v2715_v44 = vpop.eup %2714  ;;  %v1564_v31 = vmul.f32 %v1468_v56, %v796_v41  ;;  %v1553_v28 = vadd.f32 1.0, %v2713_v50  ;;  %v954_v41 = vmul.f32 0.044715, %v3712_v63 }
 0x14f   : > { %v1090_v5 = vmul.f32 %v994_v22, %v3695_v32  ;;  %v2717_v17 = vpop.eup %2716  ;;  %v1521_v42 = vadd.f32 1.0, %v2715_v44  ;;  %v1614_v29 = vmul.f32 %v1518_v0, %v846_v9 }
 0x150   : > { %v721_v34 = vpop.f32.mrf.mxu2  ;;  %v1657_v18 = vpack.c.bf16 %v1564_v31, %v1561_v19  ;;  %v1556_v10 = vadd.f32 1.0, %v2717_v17  ;;  %v3732_v52 = vmul.f32 %v1553_v28, %v881_v23  ;;  %v1050_v44 = vmul.f32 %v954_v41, %v3712_v63  ;;  %v2807_v28 = vld [vmem:[%s2968_s22 + $0x58] sm:$0xff] }
 0x151   : > { %v3722_v62 = vadd.f32 %v721_v34, %v3546_v48  ;;  %v1186_v27 = vadd.f32 %v1090_v5, %v3695_v32  ;;  %v1617_v1 = vmul.f32 %v1521_v42, %v849_v11  ;;  %v1053_v19 = vmul.f32 %v957_v40, %v3727_v59  ;;  %v4166_v5 = vld [vmem:[#allocation3_spill] sm:$0xff] }
 0x152   : > { %2085 = vmatmul.bf16.vlgmr.msrb.gmra.mxu1 %v1657_v18  ;;  %v3734_v20 = vmul.f32 %v1556_v10, %v884_v36  ;;  %v4168_v17 = vpack.c.bf16 %v4166_v5, %v4167_v12  ;;  %v799_v34 = vmul.f32 0.5, %v3667_v4  ;;  %v802_v18 = vmul.f32 0.5, %v3695_v32 }
 0x153   : > { %v901_v8 = vmul.f32 0.044715, %v3722_v62  ;;  %v1282_v13 = vmul.f32 0.7978846, %v1186_v27  ;;  %v2719_v56 = vpop.eup %2718  ;;  %v1683_v54 = vpack.c.bf16 %v1617_v1, %v1614_v29  ;;  %v1146_v10 = vmul.f32 %v1050_v44, %v3712_v63 }
 0x154   : > { %v1700_v47 = vpack.c.bf16 %v3734_v20, %v3732_v52  ;;  %v1471_v31 = vadd.f32 1.0, %v2719_v56  ;;  %v855_v4 = vmul.f32 0.5, %v3425_v46 }
 0x155   : > { %2720 = vtanh.f32 %v1282_v13  ;;  %v997_v16 = vmul.f32 %v901_v8, %v3722_v62  ;;  %v1149_v8 = vmul.f32 %v1053_v19, %v3727_v59  ;;  %v852_v13 = vmul.f32 0.5, %v3417_v55  ;;  %v3773_v46 = vpop.f32.mrf.mxu3 }
 0x156   : > { %2722 = vtanh.f32 %v1332_v14  ;;  %v1567_v23 = vmul.f32 %v1471_v31, %v799_v34  ;;  %v1242_v1 = vadd.f32 %v1146_v10, %v3712_v63  ;;  %v3771_v55 = vadd.f32 %v3571_v35, %v3101_v39  ;;  %v4170_v10 = vld [vmem:[#allocation5_spill] sm:$0xff] }
 0x157   : > { %v1093_v50 = vmul.f32 %v997_v16, %v3722_v62  ;;  %2724 = vtanh.f32 %v1335_v21  ;;  %v1245_v16 = vadd.f32 %v1149_v8, %v3727_v59 }
 0x158   : > { %v723_v22 = vpop.f32.mrf.mxu2  ;;  %v960_v35 = vmul.f32 0.044715, %v3771_v55 }
 0x159   : > { %v3745_v45 = vadd.f32 %v723_v22, %v3546_v48  ;;  %v1189_v24 = vadd.f32 %v1093_v50, %v3722_v62  ;;  %v1338_v50 = vmul.f32 0.7978846, %v1242_v1  ;;  %v3777_v22 = vadd.f32 %v3610_v61, %v3101_v39 }
 0x15a   : > { %v1341_v44 = vmul.f32 0.7978846, %v1245_v16 }
 0x15b   : > { %v2721_v9 = vpop.eup %2720  ;;  %v904_v11 = vmul.f32 0.044715, %v3745_v45  ;;  %v1285_v27 = vmul.f32 0.7978846, %v1189_v24  ;;  %v963_v5 = vmul.f32 0.044715, %v3777_v22 }
 0x15c   : > { %1952 = vmatmul.bf16.gmra.mxu3 %v4168_v17  ;;  %v1474_v0 = vadd.f32 1.0, %v2721_v9  ;;  %v2723_v33 = vpop.eup %2722  ;;  %v867_v30 = vmul.f32 0.5, %v3777_v22 }
 0x15d   : > { %2041 = vmatmul.bf16.gmra.mxu0 %v1683_v54  ;;  %765 = vmatmul.bf16.gmra.mxu2 %v2807_v28  ;;  %v1000_v42 = vmul.f32 %v904_v11, %v3745_v45  ;;  %v2725_v58 = vpop.eup %2724  ;;  %v1524_v29 = vadd.f32 1.0, %v2723_v33  ;;  %2726 = vtanh.f32 %v1285_v27 }
 0x15e   : > { %v1570_v36 = vmul.f32 %v1474_v0, %v802_v18  ;;  %v1527_v40 = vadd.f32 1.0, %v2725_v58  ;;  %v1056_v0 = vmul.f32 %v960_v35, %v3771_v55 }
 0x15f   : > { %v1096_v32 = vmul.f32 %v1000_v42, %v3745_v45  ;;  %v1620_v19 = vmul.f32 %v1524_v29, %v852_v13  ;;  %v1059_v42 = vmul.f32 %v963_v5, %v3777_v22  ;;  %v805_v13 = vmul.f32 0.5, %v3722_v62 }
 0x160   : > { %v726_v14 = vpop.f32.mrf.mxu2  ;;  %v1660_v21 = vpack.c.bf16 %v1570_v36, %v1567_v23  ;;  %v1623_v31 = vmul.f32 %v1527_v40, %v855_v4  ;;  %v3791_v23 = vpop.f32.mrf.mxu3  ;;  %v4169_v36 = vld [vmem:[#allocation4_spill] sm:$0xff]  ;;  %v808_v4 = vmul.f32 0.5, %v3745_v45 }
 0x161   : > { %v3766_v41 = vadd.f32 %v726_v14, %v3546_v48  ;;  %v1192_v56 = vadd.f32 %v1096_v32, %v3745_v45  ;;  %v4171_v8 = vpack.c.bf16 %v4169_v36, %v4170_v10  ;;  %v1155_v45 = vmul.f32 %v1059_v42, %v3777_v22  ;;  %v3825_v36 = vpop.f32.mrf.mxu0 }
 0x162   : > { %2090 = vmatmul.bf16.gmra.mxu1 %v1660_v21  ;;  %v1686_v34 = vpack.c.bf16 %v1623_v31, %v1620_v19  ;;  %v2808_v21 = vld [vmem:[%s2968_s22 + $0x60] sm:$0xff] }
 0x163   : > { %v907_v54 = vmul.f32 0.044715, %v3766_v41  ;;  %v1288_v24 = vmul.f32 0.7978846, %v1192_v56  ;;  %v2727_v11 = vpop.eup %2726  ;;  %v1152_v56 = vmul.f32 %v1056_v0, %v3771_v55 }
 0x164   : > { %v1477_v33 = vadd.f32 1.0, %v2727_v11 }
 0x165   : > { %2728 = vtanh.f32 %v1288_v24  ;;  %v1003_v9 = vmul.f32 %v907_v54, %v3766_v41  ;;  %v861_v54 = vmul.f32 0.5, %v3727_v59  ;;  %v3813_v59 = vadd.f32 %v3639_v7, %v3101_v39 }
 0x166   : > { %2730 = vtanh.f32 %v1338_v50  ;;  %v1573_v16 = vmul.f32 %v1477_v33, %v805_v13  ;;  %v858_v50 = vmul.f32 0.5, %v3712_v63  ;;  %v1251_v63 = vadd.f32 %v1155_v45, %v3777_v22  ;;  %v2809_v45 = vld [vmem:[%s2968_s22 + $0x68] sm:$0xff] }
 0x167   : > { %2732 = vtanh.f32 %v1341_v44  ;;  %v1099_v12 = vmul.f32 %v1003_v9, %v3766_v41  ;;  %v1248_v9 = vadd.f32 %v1152_v56, %v3771_v55  ;;  %v966_v42 = vmul.f32 0.044715, %v3813_v59 }
 0x168   : > { %v728_v61 = vpop.f32.mrf.mxu2 }
 0x169   : > { %v3785_v17 = vadd.f32 %v728_v61, %v3546_v48  ;;  %v1195_v18 = vadd.f32 %v1099_v12, %v3766_v41  ;;  %v1344_v5 = vmul.f32 0.7978846, %v1248_v9  ;;  %v3817_v12 = vadd.f32 %v3674_v15, %v3101_v39 }
 0x16a   : > { %v864_v9 = vmul.f32 0.5, %v3771_v55 }
 0x16b   : > { %v2729_v28 = vpop.eup %2728  ;;  %v910_v27 = vmul.f32 0.044715, %v3785_v17  ;;  %v1291_v1 = vmul.f32 0.7978846, %v1195_v18  ;;  %v1347_v18 = vmul.f32 0.7978846, %v1251_v63 }
 0x16c   : > { %v2731_v58 = vpop.eup %2730  ;;  %1957 = vmatmul.bf16.gmra.mxu3 %v4171_v8  ;;  %v1480_v32 = vadd.f32 1.0, %v2729_v28  ;;  %v814_v56 = vmul.f32 0.5, %v3785_v17  ;;  %v873_v53 = vmul.f32 0.5, %v3817_v12 }
 0x16d   : > { %v2733_v14 = vpop.eup %2732  ;;  %2046 = vmatmul.bf16.gmra.mxu0 %v1686_v34  ;;  %770 = vmatmul.bf16.gmra.mxu2 %v2808_v21  ;;  %v1006_v29 = vmul.f32 %v910_v27, %v3785_v17  ;;  %v1530_v19 = vadd.f32 1.0, %v2731_v58  ;;  %2734 = vtanh.f32 %v1291_v1  ;;  %v3822_v27 = vpop.f32.mrf.mxu3  ;;  %v969_v58 = vmul.f32 0.044715, %v3817_v12 }
 0x16e   : > { %v1576_v40 = vmul.f32 %v1480_v32, %v808_v4  ;;  %v1533_v31 = vadd.f32 1.0, %v2733_v14  ;;  %v1062_v32 = vmul.f32 %v966_v42, %v3813_v59 }
 0x16f   : > { %v1102_v62 = vmul.f32 %v1006_v29, %v3785_v17  ;;  %v1626_v33 = vmul.f32 %v1530_v19, %v858_v50  ;;  %v1065_v29 = vmul.f32 %v969_v58, %v3817_v12 }
 0x170   : > { %v731_v24 = vpop.f32.mrf.mxu2  ;;  %v1663_v44 = vpack.c.bf16 %v1576_v40, %v1573_v16  ;;  %v1629_v28 = vmul.f32 %v1533_v31, %v861_v54  ;;  %v811_v40 = vmul.f32 0.5, %v3766_v41  ;;  %v1158_v31 = vmul.f32 %v1062_v32, %v3813_v59 }
 0x171   : > { %v3807_v35 = vadd.f32 %v731_v24, %v3546_v48  ;;  %v1198_v11 = vadd.f32 %v1102_v62, %v3785_v17 }
 0x172   : > { %2095 = vmatmul.bf16.gmra.mxu1 %v1663_v44  ;;  %v1689_v13 = vpack.c.bf16 %v1629_v28, %v1626_v33  ;;  %v3863_v28 = vadd.f32 %v3742_v57, %v3101_v39 }
 0x173   : > { %v913_v61 = vmul.f32 0.044715, %v3807_v35  ;;  %v1294_v34 = vmul.f32 0.7978846, %v1198_v11  ;;  %v2735_v7 = vpop.eup %2734 }
 0x174   : > { %v1483_v14 = vadd.f32 1.0, %v2735_v7  ;;  %v975_v32 = vmul.f32 0.044715, %v3863_v28  ;;  %v879_v38 = vmul.f32 0.5, %v3863_v28 }
 0x175   : > { %v1009_v0 = vmul.f32 %v913_v61, %v3807_v35  ;;  %2736 = vtanh.f32 %v1294_v34  ;;  %v3847_v41 = vpop.f32.mrf.mxu3  ;;  %v1254_v61 = vadd.f32 %v1158_v31, %v3813_v59  ;;  %v3850_v34 = vpop.f32.mrf.mxu0 }
 0x176   : > { %2738 = vtanh.f32 %v1344_v5  ;;  %v1579_v44 = vmul.f32 %v1483_v14, %v811_v40 }
 0x177   : > { %2740 = vtanh.f32 %v1347_v18  ;;  %v1105_v15 = vmul.f32 %v1009_v0, %v3807_v35  ;;  %v3859_v0 = vadd.f32 %v3714_v3, %v3101_v39  ;;  %v1350_v33 = vmul.f32 0.7978846, %v1254_v61 }
 0x178   : > { %v733_v10 = vpop.f32.mrf.mxu2 }
 0x179   : > { %v3829_v8 = vadd.f32 %v733_v10, %v3546_v48  ;;  %v1201_v4 = vadd.f32 %v1105_v15, %v3807_v35  ;;  %v876_v51 = vmul.f32 0.5, %v3859_v0 }
 0x17b   : > { %v2737_v21 = vpop.eup %2736  ;;  %v916_v1 = vmul.f32 0.044715, %v3829_v8  ;;  %v1297_v24 = vmul.f32 0.7978846, %v1201_v4  ;;  %v972_v4 = vmul.f32 0.044715, %v3859_v0 }
 0x17c   : > { %v2739_v16 = vpop.eup %2738  ;;  %1962 = vmatmul.bf16.gmra.mxu3 %v1688_v26  ;;  %v1486_v50 = vadd.f32 1.0, %v2737_v21  ;;  %v1161_v26 = vmul.f32 %v1065_v29, %v3817_v12 }
 0x17d   : > { %v2741_v54 = vpop.eup %2740  ;;  %v1012_v62 = vmul.f32 %v916_v1, %v3829_v8  ;;  %2051 = vmatmul.bf16.gmra.mxu0 %v1689_v13  ;;  %775 = vmatmul.bf16.gmra.mxu2 %v2809_v45  ;;  %v1536_v63 = vadd.f32 1.0, %v2739_v16  ;;  %2742 = vtanh.f32 %v1297_v24  ;;  %v1068_v16 = vmul.f32 %v972_v4, %v3859_v0  ;;  %v3875_v40 = vpop.f32.mrf.mxu3 }
 0x17e   : > { %v1582_v19 = vmul.f32 %v1486_v50, %v814_v56  ;;  %v1539_v5 = vadd.f32 1.0, %v2741_v54  ;;  %v1257_v22 = vadd.f32 %v1161_v26, %v3817_v12  ;;  %v1071_v54 = vmul.f32 %v975_v32, %v3863_v28 }
 0x17f   : > { %v1108_v25 = vmul.f32 %v1012_v62, %v3829_v8  ;;  %v1632_v10 = vmul.f32 %v1536_v63, %v864_v9  ;;  %v3878_v62 = vpop.f32.mrf.mxu0  ;;  %v1164_v63 = vmul.f32 %v1068_v16, %v3859_v0  ;;  %v3901_v12 = vadd.f32 %v3773_v46, %v3101_v39 }
 0x180   : > { %v736_v17 = vpop.f32.mrf.mxu2  ;;  %v1666_v11 = vpack.c.bf16 %v1582_v19, %v1579_v44  ;;  %v1353_v58 = vmul.f32 0.7978846, %v1257_v22  ;;  %v1635_v13 = vmul.f32 %v1539_v5, %v867_v30  ;;  %v817_v44 = vmul.f32 0.5, %v3807_v35 }
 0x181   : > { %v3853_v18 = vadd.f32 %v736_v17, %v3546_v48  ;;  %v1204_v55 = vadd.f32 %v1108_v25, %v3829_v8  ;;  %v820_v19 = vmul.f32 0.5, %v3829_v8  ;;  %v2810_v25 = vld [vmem:[%s2968_s22 + $0x70] sm:$0xff]  ;;  %v870_v5 = vmul.f32 0.5, %v3813_v59 }
 0x182   : > { %2100 = vmatmul.bf16.gmra.mxu1 %v1666_v11  ;;  %v1692_v29 = vpack.c.bf16 %v1635_v13, %v1632_v10  ;;  %v1260_v22 = vadd.f32 %v1164_v63, %v3859_v0  ;;  %v978_v46 = vmul.f32 0.044715, %v3901_v12 }
 0x183   : > { %v919_v42 = vmul.f32 0.044715, %v3853_v18  ;;  %v1300_v7 = vmul.f32 0.7978846, %v1204_v55  ;;  %v2743_v3 = vpop.eup %2742 }
 0x184   : > { %v1489_v56 = vadd.f32 1.0, %v2743_v3 }
 0x185   : > { %v1015_v15 = vmul.f32 %v919_v42, %v3853_v18  ;;  %2744 = vtanh.f32 %v1300_v7  ;;  %v1356_v7 = vmul.f32 0.7978846, %v1260_v22  ;;  %v3908_v4 = vpop.f32.mrf.mxu3 }
 0x186   : > { %2746 = vtanh.f32 %v1350_v33  ;;  %v1585_v17 = vmul.f32 %v1489_v56, %v817_v44 }
 0x187   : > { %2748 = vtanh.f32 %v1353_v58  ;;  %v1111_v14 = vmul.f32 %v1015_v15, %v3853_v18  ;;  %v3905_v58 = vadd.f32 %v3791_v23, %v3101_v39  ;;  %v3910_v3 = vpop.f32.mrf.mxu0 }
 0x188   : > { %v738_v57 = vpop.f32.mrf.mxu2 }
 0x189   : > { %v3871_v21 = vadd.f32 %v738_v57, %v3546_v48  ;;  %v1207_v1 = vadd.f32 %v1111_v14, %v3853_v18  ;;  %v981_v39 = vmul.f32 0.044715, %v3905_v58 }
 0x18b   : > { %v2745_v50 = vpop.eup %2744  ;;  %v922_v45 = vmul.f32 0.044715, %v3871_v21  ;;  %v1303_v26 = vmul.f32 0.7978846, %v1207_v1  ;;  %v1077_v44 = vmul.f32 %v981_v39, %v3905_v58 }
 0x18c   : > { %v2747_v24 = vpop.eup %2746  ;;  %1967 = vmatmul.bf16.gmra.mxu3 %v1691_v60  ;;  %v1492_v31 = vadd.f32 1.0, %v2745_v50  ;;  %v1167_v60 = vmul.f32 %v1071_v54, %v3863_v28  ;;  %v1074_v54 = vmul.f32 %v978_v46, %v3901_v12 }
 0x18d   : > { %v2749_v9 = vpop.eup %2748  ;;  %v1018_v30 = vmul.f32 %v922_v45, %v3871_v21  ;;  %2056 = vmatmul.bf16.gmra.mxu0 %v1692_v29  ;;  %780 = vmatmul.bf16.gmra.mxu2 %v2810_v25  ;;  %v1542_v61 = vadd.f32 1.0, %v2747_v24  ;;  %2750 = vtanh.f32 %v1303_v26 }
 0x18e   : > { %v1588_v11 = vmul.f32 %v1492_v31, %v820_v19  ;;  %v1545_v55 = vadd.f32 1.0, %v2749_v9  ;;  %v1263_v59 = vadd.f32 %v1167_v60, %v3863_v28  ;;  %v823_v9 = vmul.f32 0.5, %v3853_v18 }
 0x18f   : > { %v1114_v37 = vmul.f32 %v1018_v30, %v3871_v21  ;;  %v1638_v14 = vmul.f32 %v1542_v61, %v870_v5  ;;  %v826_v30 = vmul.f32 0.5, %v3871_v21  ;;  %v3926_v5 = vpop.f32.mrf.mxu3  ;;  %v1170_v60 = vmul.f32 %v1074_v54, %v3901_v12 }
 0x190   : > { %v741_v35 = vpop.f32.mrf.mxu2  ;;  %v1669_v8 = vpack.c.bf16 %v1588_v11, %v1585_v17  ;;  %v1359_v13 = vmul.f32 0.7978846, %v1263_v59  ;;  %v1641_v57 = vmul.f32 %v1545_v55, %v873_v53  ;;  %v2811_v11 = vld [vmem:[%s2968_s22 + $0x78] sm:$0xff]  ;;  %v1173_v18 = vmul.f32 %v1077_v44, %v3905_v58 }
 0x191   : > { %v3895_v33 = vadd.f32 %v741_v35, %v3546_v48  ;;  %v1210_v42 = vadd.f32 %v1114_v37, %v3871_v21  ;;  %v3929_v35 = vpop.f32.mrf.mxu0  ;;  %v1266_v22 = vadd.f32 %v1170_v60, %v3901_v12  ;;  %v882_v60 = vmul.f32 0.5, %v3901_v12 }
 0x192   : > { %2105 = vmatmul.bf16.gmra.mxu1 %v1669_v8  ;;  %v1695_v56 = vpack.c.bf16 %v1641_v57, %v1638_v14 }
 0x193   : > { %v925_v15 = vmul.f32 0.044715, %v3895_v33  ;;  %v1306_v10 = vmul.f32 0.7978846, %v1210_v42  ;;  %v2751_v29 = vpop.eup %2750  ;;  %v829_v44 = vmul.f32 0.5, %v3895_v33 }
 0x194   : > { %v1495_v45 = vadd.f32 1.0, %v2751_v29 }
 0x195   : > { %v1021_v32 = vmul.f32 %v925_v15, %v3895_v33  ;;  %2752 = vtanh.f32 %v1306_v10  ;;  %v1362_v15 = vmul.f32 0.7978846, %v1266_v22 }
 0x196   : > { %2754 = vtanh.f32 %v1356_v7  ;;  %v1591_v53 = vmul.f32 %v1495_v45, %v823_v9  ;;  %v1269_v7 = vadd.f32 %v1173_v18, %v3905_v58 }
 0x197   : > { %2756 = vtanh.f32 %v1359_v13  ;;  %v1117_v23 = vmul.f32 %v1021_v32, %v3895_v33  ;;  %v3942_v29 = vpop.f32.mrf.mxu3 }
 0x198   : > { %v743_v1 = vpop.f32.mrf.mxu2  ;;  %v1365_v10 = vmul.f32 0.7978846, %v1269_v7 }
 0x199   : > { %v744_v16 = vadd.f32 %v743_v1, %v3546_v48  ;;  %v1213_v50 = vadd.f32 %v1117_v23, %v3895_v33  ;;  %v3944_v23 = vpop.f32.mrf.mxu0 }
 0x19b   : > { %v2753_v24 = vpop.eup %2752  ;;  %v928_v19 = vmul.f32 0.044715, %v744_v16  ;;  %v1309_v63 = vmul.f32 0.7978846, %v1213_v50 }
 0x19c   : > { %v2755_v31 = vpop.eup %2754  ;;  %1972 = vmatmul.bf16.gmra.mxu3 %v1694_v49  ;;  %v1498_v25 = vadd.f32 1.0, %v2753_v24 }
 0x19d   : > { %v2757_v26 = vpop.eup %2756  ;;  %v1024_v17 = vmul.f32 %v928_v19, %v744_v16  ;;  %2061 = vmatmul.bf16.gmra.mxu0 %v1695_v56  ;;  %785 = vmatmul.bf16.gmra.mxu2 %v2811_v11  ;;  %v1548_v61 = vadd.f32 1.0, %v2755_v31  ;;  %2758 = vtanh.f32 %v1309_v63  ;;  %v832_v19 = vmul.f32 0.5, %v744_v16 }
 0x19e   : > { %v1594_v37 = vmul.f32 %v1498_v25, %v826_v30  ;;  %v1551_v55 = vadd.f32 1.0, %v2757_v26 }
 0x19f   : > { %v1120_v49 = vmul.f32 %v1024_v17, %v744_v16  ;;  %v1644_v32 = vmul.f32 %v1548_v61, %v876_v51  ;;  %v885_v51 = vmul.f32 0.5, %v3905_v58 }
 0x1a0   : > { %v746_v21 = vpop.f32.mrf.mxu2  ;;  %v1672_v8 = vpack.c.bf16 %v1594_v37, %v1591_v53  ;;  %v1647_v14 = vmul.f32 %v1551_v55, %v879_v38 }
 0x1a1   : > { %v3936_v42 = vadd.f32 %v746_v21, %v3546_v48  ;;  %v1216_v59 = vadd.f32 %v1120_v49, %v744_v16  ;;  %v3955_v16 = vpop.f32.mrf.mxu3  ;;  %v3957_v38 = vpop.f32.mrf.mxu0 }
 0x1a2   : > { %2110 = vmatmul.bf16.gmra.mxu1 %v1672_v8  ;;  %v1698_v56 = vpack.c.bf16 %v1647_v14, %v1644_v32 }
 0x1a3   : > { %v931_v0 = vmul.f32 0.044715, %v3936_v42  ;;  %v1312_v28 = vmul.f32 0.7978846, %v1216_v59  ;;  %v2759_v57 = vpop.eup %2758 }
 0x1a4   : > { %v1501_v54 = vadd.f32 1.0, %v2759_v57 }
 0x1a5   : > { %v1027_v13 = vmul.f32 %v931_v0, %v3936_v42  ;;  %2760 = vtanh.f32 %v1312_v28 }
 0x1a6   : > { %2762 = vtanh.f32 %v1362_v15  ;;  %v1597_v17 = vmul.f32 %v1501_v54, %v829_v44 }
 0x1a7   : > { %v1123_v46 = vmul.f32 %v1027_v13, %v3936_v42  ;;  %2764 = vtanh.f32 %v1365_v10  ;;  %v835_v13 = vmul.f32 0.5, %v3936_v42 }
 0x1a8   : > { %v748_v39 = vpop.f32.mrf.mxu2 }
 0x1a9   : > { %v749_v1 = vadd.f32 %v748_v39, %v3546_v48  ;;  %v1219_v50 = vadd.f32 %v1123_v46, %v3936_v42  ;;  %v3960_v10 = vpop.f32.mrf.mxu3  ;;  %v3966_v57 = vpop.f32.mrf.mxu0  ;;  %v3972_v42 = vld [vmem:[%s4153_s4] ss:$0 sm:$0xff] }
 0x1ab   : > { %v2761_v45 = vpop.eup %2760  ;;  %v934_v24 = vmul.f32 0.044715, %v749_v1  ;;  %v1315_v25 = vmul.f32 0.7978846, %v1219_v50  ;;  %v838_v32 = vmul.f32 0.5, %v749_v1 }
 0x1ac   : > { %1977 = vmatmul.bf16.gmra.mxu3 %v1697_v6  ;;  %v1504_v31 = vadd.f32 1.0, %v2761_v45  ;;  %v2763_v9 = vpop.eup %2762 }
 0x1ad   : > { %v1030_v30 = vmul.f32 %v934_v24, %v749_v1  ;;  %2066 = vmatmul.bf16.gmra.mxu0 %v1698_v56  ;;  %v2765_v26 = vpop.eup %2764  ;;  %v1554_v2 = vadd.f32 1.0, %v2763_v9  ;;  %2766 = vtanh.f32 %v1315_v25 }
 0x1ae   : > { %v1600_v11 = vmul.f32 %v1504_v31, %v832_v19  ;;  %v1557_v6 = vadd.f32 1.0, %v2765_v26  ;;  %v1909_v26 = vadd.f32 %v3972_v42, %v3822_v27 }
 0x1af   : > { %v1126_v63 = vmul.f32 %v1030_v30, %v749_v1  ;;  %v1650_v8 = vmul.f32 %v1554_v2, %v882_v60 }
 0x1b0   : > { %v751_v53 = vpop.f32.mrf.mxu2  ;;  %v1675_v37 = vpack.c.bf16 %v1600_v11, %v1597_v17  ;;  %v1653_v61 = vmul.f32 %v1557_v6, %v885_v51  ;;  %v1998_v6 = vadd.f32 %v3825_v36, %v1909_v26  ;;  %v1911_v36 = vadd.f32 %v3972_v42, %v3847_v41 }
 0x1b1   : > { %v752_v43 = vadd.f32 %v751_v53, %v3546_v48  ;;  %v1222_v33 = vadd.f32 %v1126_v63, %v749_v1  ;;  %v1914_v41 = vadd.f32 %v3972_v42, %v3875_v40 }
 0x1b2   : > { %2115 = vmatmul.bf16.gmra.mxu1 %v1675_v37  ;;  %v1701_v59 = vpack.c.bf16 %v1653_v61, %v1650_v8 }
 0x1b3   : > { %v937_v49 = vmul.f32 0.044715, %v752_v43  ;;  %v1318_v18 = vmul.f32 0.7978846, %v1222_v33  ;;  %v2767_v12 = vpop.eup %2766  ;;  %v841_v53 = vmul.f32 0.5, %v752_v43 }
 0x1b4   : > { %v1507_v0 = vadd.f32 1.0, %v2767_v12 }
 0x1b5   : > { %v1033_v21 = vmul.f32 %v937_v49, %v752_v43  ;;  %2768 = vtanh.f32 %v1318_v18 }
 0x1b6   : > { %v1603_v56 = vmul.f32 %v1507_v0, %v835_v13 }
 0x1b7   : > { %v1129_v55 = vmul.f32 %v1033_v21, %v752_v43 }
 0x1b8   : > { %v753_v58 = vpop.f32.mrf.mxu2 }
 0x1b9   : > { %v754_v22 = vadd.f32 %v753_v58, %v3546_v48  ;;  %v1225_v7 = vadd.f32 %v1129_v55, %v752_v43 }
 0x1bb   : > { %v2769_v28 = vpop.eup %2768  ;;  %v940_v15 = vmul.f32 0.044715, %v754_v22  ;;  %v1321_v39 = vmul.f32 0.7978846, %v1225_v7  ;;  %v844_v37 = vmul.f32 0.5, %v754_v22 }
 0x1bc   : > { %1982 = vmatmul.bf16.gmra.mxu3 %v1700_v47  ;;  %v1510_v14 = vadd.f32 1.0, %v2769_v28 }
 0x1bd   : > { %v1036_v46 = vmul.f32 %v940_v15, %v754_v22  ;;  %2071 = vmatmul.bf16.gmra.mxu0 %v1701_v59  ;;  %2770 = vtanh.f32 %v1321_v39  ;;  %v2000_v59 = vadd.f32 %v3850_v34, %v1911_v36 }
 0x1be   : > { %v1606_v50 = vmul.f32 %v1510_v14, %v838_v32  ;;  %v3989_v32 = vpop.f32.mrf.mxu3 }
 0x1bf   : > { %v1132_v54 = vmul.f32 %v1036_v46, %v754_v22 }
 0x1c0   : > { %v756_v45 = vpop.f32.mrf.mxu2  ;;  %v1678_v24 = vpack.c.bf16 %v1606_v50, %v1603_v56 }
 0x1c1   : > { %v757_v44 = vadd.f32 %v756_v45, %v3546_v48  ;;  %v1228_v19 = vadd.f32 %v1132_v54, %v754_v22 }
 0x1c2   : > { %2120 = vmatmul.bf16.gmra.mxu1 %v1678_v24 }
 0x1c3   : > { %v943_v52 = vmul.f32 0.044715, %v757_v44  ;;  %v1324_v20 = vmul.f32 0.7978846, %v1228_v19  ;;  %v2771_v1 = vpop.eup %2770  ;;  %v847_v54 = vmul.f32 0.5, %v757_v44 }
 0x1c4   : > { %v1513_v17 = vadd.f32 1.0, %v2771_v1  ;;  %v3996_v1 = vpop.f32.mrf.mxu0 }
 0x1c5   : > { %v1039_v47 = vmul.f32 %v943_v52, %v757_v44  ;;  %2772 = vtanh.f32 %v1324_v20  ;;  %v2003_v52 = vadd.f32 %v3878_v62, %v1914_v41 }
 0x1c6   : > { %v1609_v33 = vmul.f32 %v1513_v17, %v841_v53  ;;  %v4004_v62 = vpop.f32.mrf.mxu3 }
 0x1c7   : > { %v1135_v31 = vmul.f32 %v1039_v47, %v757_v44 }
 0x1c8   : > { %v758_v9 = vpop.f32.mrf.mxu2 }
 0x1c9   : > { %v759_v30 = vadd.f32 %v758_v9, %v3546_v48  ;;  %v1231_v25 = vadd.f32 %v1135_v31, %v757_v44 }
 0x1cb   : > { %v2773_v11 = vpop.eup %2772  ;;  %v946_v63 = vmul.f32 0.044715, %v759_v30  ;;  %v1327_v2 = vmul.f32 0.7978846, %v1231_v25  ;;  %v850_v45 = vmul.f32 0.5, %v759_v30 }
 0x1cc   : > { %v1516_v60 = vadd.f32 1.0, %v2773_v11 }
 0x1cd   : > { %v1042_v51 = vmul.f32 %v946_v63, %v759_v30  ;;  %2774 = vtanh.f32 %v1327_v2 }
 0x1ce   : > { %v1612_v49 = vmul.f32 %v1516_v60, %v844_v37 }
 0x1cf   : > { %v2086_v27 = vpop.f32.mrf.mxu1  ;;  %v1138_v18 = vmul.f32 %v1042_v51, %v759_v30 }
 0x1d0   : > { %v2087_v21 = vadd.f32 %v2086_v27, %v1998_v6  ;;  %v761_v8 = vpop.f32.mrf.mxu2  ;;  %v1681_v61 = vpack.c.bf16 %v1612_v49, %v1609_v33 }
 0x1d1   : > { %v762_v43 = vadd.f32 %v761_v8, %v3546_v48  ;;  %v1234_v12 = vadd.f32 %v1138_v18, %v759_v30  ;;  %v1916_v30 = vadd.f32 %v3972_v42, %v3908_v4  ;;  %v4010_v4 = vpop.f32.mrf.mxu0  ;;  %v1919_v18 = vadd.f32 %v3972_v42, %v3926_v5 }
 0x1d2   : > { %2166 = vst [vmem:[%s3982_s17] sm:$0xff] %v2087_v21  ;;  %2125 = vmatmul.bf16.gmra.mxu1 %v1681_v61 }
 0x1d3   : > { %v949_v55 = vmul.f32 0.044715, %v762_v43  ;;  %v1330_v58 = vmul.f32 0.7978846, %v1234_v12  ;;  %v2775_v7 = vpop.eup %2774  ;;  %v2005_v37 = vadd.f32 %v3910_v3, %v1916_v30  ;;  %v853_v3 = vmul.f32 0.5, %v762_v43 }
 0x1d4   : > { %v1519_v39 = vadd.f32 1.0, %v2775_v7 }
 0x1d5   : > { %v1045_v22 = vmul.f32 %v949_v55, %v762_v43  ;;  %2776 = vtanh.f32 %v1330_v58  ;;  %v4017_v55 = vpop.f32.mrf.mxu3 }
 0x1d6   : > { %v1615_v20 = vmul.f32 %v1519_v39, %v847_v54 }
 0x1d7   : > { %v2088_v0 = vpop.f32.mrf.mxu1  ;;  %v1141_v28 = vmul.f32 %v1045_v22, %v762_v43 }
 0x1d8   : > { %v2089_v15 = vadd.f32 %v2088_v0, %v2000_v59  ;;  %v763_v13 = vpop.f32.mrf.mxu2  ;;  %v2008_v59 = vadd.f32 %v3929_v35, %v1919_v18  ;;  %v1926_v18 = vadd.f32 %v3972_v42, %v3960_v10 }
 0x1d9   : > { %v764_v14 = vadd.f32 %v763_v13, %v3546_v48  ;;  %v1237_v46 = vadd.f32 %v1141_v28, %v762_v43  ;;  %v4026_v39 = vpop.f32.mrf.mxu0 }
 0x1da   : > { %2167 = vst [vmem:[%s3982_s17 + $0x8] sm:$0xff] %v2089_v15 }
 0x1db   : > { %v2777_v56 = vpop.eup %2776  ;;  %v952_v50 = vmul.f32 0.044715, %v764_v14  ;;  %v1333_v19 = vmul.f32 0.7978846, %v1237_v46  ;;  %v856_v12 = vmul.f32 0.5, %v764_v14 }
 0x1dc   : > { %v1522_v34 = vadd.f32 1.0, %v2777_v56 }
 0x1dd   : > { %v1048_v24 = vmul.f32 %v952_v50, %v764_v14  ;;  %2778 = vtanh.f32 %v1333_v19 }
 0x1de   : > { %v1618_v47 = vmul.f32 %v1522_v34, %v850_v45  ;;  %v4031_v34 = vpop.f32.mrf.mxu3 }
 0x1df   : > { %v2091_v31 = vpop.f32.mrf.mxu1  ;;  %v1144_v9 = vmul.f32 %v1048_v24, %v764_v14 }
 0x1e0   : > { %v2092_v25 = vadd.f32 %v2091_v31, %v2003_v52  ;;  %v766_v40 = vpop.f32.mrf.mxu2  ;;  %v1684_v26 = vpack.c.bf16 %v1618_v47, %v1615_v20  ;;  %v1924_v31 = vadd.f32 %v3972_v42, %v3955_v16 }
 0x1e1   : > { %v3999_v17 = vadd.f32 %v766_v40, %v3546_v48  ;;  %v1240_v44 = vadd.f32 %v1144_v9, %v764_v14  ;;  %v1921_v14 = vadd.f32 %v3972_v42, %v3942_v29  ;;  %v4040_v30 = vpop.f32.mrf.mxu0 }
 0x1e2   : > { %2168 = vst [vmem:[%s3982_s17 + $0x10] sm:$0xff] %v2092_v25  ;;  %2130 = vmatmul.bf16.gmra.mxu1 %v1684_v26 }
 0x1e3   : > { %v955_v11 = vmul.f32 0.044715, %v3999_v17  ;;  %v1336_v63 = vmul.f32 0.7978846, %v1240_v44  ;;  %v2779_v60 = vpop.eup %2778  ;;  %v2010_v54 = vadd.f32 %v3944_v23, %v1921_v14  ;;  %v859_v23 = vmul.f32 0.5, %v3999_v17 }
 0x1e4   : > { %v1525_v21 = vadd.f32 1.0, %v2779_v60 }
 0x1e5   : > { %v1051_v53 = vmul.f32 %v955_v11, %v3999_v17  ;;  %2780 = vtanh.f32 %v1336_v63 }
 0x1e6   : > { %v1621_v7 = vmul.f32 %v1525_v21, %v853_v3 }
 0x1e7   : > { %v2093_v51 = vpop.f32.mrf.mxu1  ;;  %v1147_v2 = vmul.f32 %v1051_v53, %v3999_v17  ;;  %v2013_v53 = vadd.f32 %v3957_v38, %v1924_v31 }
 0x1e8   : > { %v2094_v6 = vadd.f32 %v2093_v51, %v2005_v37  ;;  %v768_v33 = vpop.f32.mrf.mxu2 }
 0x1e9   : > { %v769_v49 = vadd.f32 %v768_v33, %v3546_v48  ;;  %v1243_v27 = vadd.f32 %v1147_v2, %v3999_v17 }
 0x1ea   : > { %2169 = vst [vmem:[%s3982_s17 + $0x18] sm:$0xff] %v2094_v6 }
 0x1eb   : > { %v2781_v8 = vpop.eup %2780  ;;  %v958_v61 = vmul.f32 0.044715, %v769_v49  ;;  %v1339_v22 = vmul.f32 0.7978846, %v1243_v27  ;;  %v862_v26 = vmul.f32 0.5, %v769_v49  ;;  %v4043_v27 = vpop.f32.mrf.mxu3 }
 0x1ec   : > { %v1528_v36 = vadd.f32 1.0, %v2781_v8 }
 0x1ed   : > { %v1054_v58 = vmul.f32 %v958_v61, %v769_v49  ;;  %2782 = vtanh.f32 %v1339_v22  ;;  %v2015_v61 = vadd.f32 %v3966_v57, %v1926_v18 }
 0x1ee   : > { %v1624_v0 = vmul.f32 %v1528_v36, %v856_v12  ;;  %v4054_v12 = vpop.f32.mrf.mxu0 }
 0x1ef   : > { %v2096_v28 = vpop.f32.mrf.mxu1  ;;  %v1150_v15 = vmul.f32 %v1054_v58, %v769_v49 }
 0x1f0   : > { %v2097_v13 = vadd.f32 %v2096_v28, %v2008_v59  ;;  %v771_v5 = vpop.f32.mrf.mxu2  ;;  %v1687_v46 = vpack.c.bf16 %v1624_v0, %v1621_v7  ;;  %v1929_v0 = vadd.f32 %v3972_v42, %v3989_v32 }
 0x1f1   : > { %v4021_v41 = vadd.f32 %v771_v5, %v3546_v48  ;;  %v1246_v43 = vadd.f32 %v1150_v15, %v769_v49 }
 0x1f2   : > { %2170 = vst [vmem:[%s3982_s17 + $0x20] sm:$0xff] %v2097_v13  ;;  %2135 = vmatmul.bf16.gmra.mxu1 %v1687_v46 }
 0x1f3   : > { %v961_v35 = vmul.f32 0.044715, %v4021_v41  ;;  %v1342_v56 = vmul.f32 0.7978846, %v1246_v43  ;;  %v2783_v45 = vpop.eup %2782  ;;  %v4062_v13 = vpop.f32.mrf.mxu3  ;;  %v865_v5 = vmul.f32 0.5, %v4021_v41 }
 0x1f4   : > { %v1531_v9 = vadd.f32 1.0, %v2783_v45 }
 0x1f5   : > { %v1057_v50 = vmul.f32 %v961_v35, %v4021_v41  ;;  %2784 = vtanh.f32 %v1342_v56  ;;  %v2018_v56 = vadd.f32 %v3996_v1, %v1929_v0 }
 0x1f6   : > { %v1627_v37 = vmul.f32 %v1531_v9, %v859_v23 }
 0x1f7   : > { %v2098_v24 = vpop.f32.mrf.mxu1  ;;  %v1153_v19 = vmul.f32 %v1057_v50, %v4021_v41 }
 0x1f8   : > { %v2099_v29 = vadd.f32 %v2098_v24, %v2010_v54  ;;  %v773_v52 = vpop.f32.mrf.mxu2 }
 0x1f9   : > { %v774_v20 = vadd.f32 %v773_v52, %v3546_v48  ;;  %v1249_v47 = vadd.f32 %v1153_v19, %v4021_v41  ;;  %v4066_v52 = vpop.f32.mrf.mxu0 }
 0x1fa   : > { %2171 = vst [vmem:[%s3982_s17 + $0x28] sm:$0xff] %v2099_v29 }
 0x1fb   : > { %v2785_v25 = vpop.eup %2784  ;;  %v964_v40 = vmul.f32 0.044715, %v774_v20  ;;  %v1345_v63 = vmul.f32 0.7978846, %v1249_v47  ;;  %v868_v46 = vmul.f32 0.5, %v774_v20  ;;  %v4075_v9 = vpop.f32.mrf.mxu3 }
 0x1fc   : > { %v1534_v44 = vadd.f32 1.0, %v2785_v25 }
 0x1fd   : > { %v1060_v11 = vmul.f32 %v964_v40, %v774_v20  ;;  %2786 = vtanh.f32 %v1345_v63 }
 0x1fe   : > { %v1630_v60 = vmul.f32 %v1534_v44, %v862_v26 }
 0x1ff   : > { %v2101_v51 = vpop.f32.mrf.mxu1  ;;  %v1156_v2 = vmul.f32 %v1060_v11, %v774_v20 }
 0x200   : > { %v2102_v16 = vadd.f32 %v2101_v51, %v2013_v53  ;;  %v776_v6 = vpop.f32.mrf.mxu2  ;;  %v1690_v33 = vpack.c.bf16 %v1630_v60, %v1627_v37  ;;  %v1934_v37 = vadd.f32 %v3972_v42, %v4017_v55 }
 0x201   : > { %v4046_v17 = vadd.f32 %v776_v6, %v3546_v48  ;;  %v1252_v49 = vadd.f32 %v1156_v2, %v774_v20  ;;  %v1931_v20 = vadd.f32 %v3972_v42, %v4004_v62  ;;  %v4085_v2 = vpop.f32.mrf.mxu0 }
 0x202   : > { %2172 = vst [vmem:[%s3982_s17 + $0x30] sm:$0xff] %v2102_v16  ;;  %2140 = vmatmul.bf16.gmra.mxu1 %v1690_v33 }
 0x203   : > { %v967_v38 = vmul.f32 0.044715, %v4046_v17  ;;  %v1348_v21 = vmul.f32 0.7978846, %v1252_v49  ;;  %v2787_v3 = vpop.eup %2786  ;;  %v2020_v40 = vadd.f32 %v4010_v4, %v1931_v20  ;;  %v871_v4 = vmul.f32 0.5, %v4046_v17 }
 0x204   : > { %v1537_v28 = vadd.f32 1.0, %v2787_v3 }
 0x205   : > { %v1063_v8 = vmul.f32 %v967_v38, %v4046_v17  ;;  %2788 = vtanh.f32 %v1348_v21  ;;  %v2023_v38 = vadd.f32 %v4026_v39, %v1934_v37 }
 0x206   : > { %v1633_v50 = vmul.f32 %v1537_v28, %v865_v5 }
 0x207   : > { %v2103_v36 = vpop.f32.mrf.mxu1  ;;  %v1159_v58 = vmul.f32 %v1063_v8, %v4046_v17 }
 0x208   : > { %v2104_v22 = vadd.f32 %v2103_v36, %v2015_v61  ;;  %v778_v59 = vpop.f32.mrf.mxu2  ;;  %v4089_v61 = vpop.f32.mrf.mxu3 }
 0x209   : > { %v779_v10 = vadd.f32 %v778_v59, %v3546_v48  ;;  %v1255_v7 = vadd.f32 %v1159_v58, %v4046_v17  ;;  %v1936_v17 = vadd.f32 %v3972_v42, %v4031_v34  ;;  %v2034_v0 = vpop.f32.mrf.mxu0  ;;  %v1939_v34 = vadd.f32 %v3972_v42, %v4043_v27 }
 0x20a   : > { %2173 = vst [vmem:[%s3982_s17 + $0x38] sm:$0xff] %v2104_v22 }
 0x20b   : > { %v2789_v15 = vpop.eup %2788  ;;  %v970_v57 = vmul.f32 0.044715, %v779_v10  ;;  %v1351_v35 = vmul.f32 0.7978846, %v1255_v7  ;;  %v874_v6 = vmul.f32 0.5, %v779_v10  ;;  %v2028_v20 = vadd.f32 %v4054_v12, %v1939_v34 }
 0x20c   : > { %v1540_v43 = vadd.f32 1.0, %v2789_v15  ;;  %v2025_v15 = vadd.f32 %v4040_v30, %v1936_v17 }
 0x20d   : > { %v1066_v14 = vmul.f32 %v970_v57, %v779_v10  ;;  %2790 = vtanh.f32 %v1351_v35 }
 0x20e   : > { %v1636_v54 = vmul.f32 %v1540_v43, %v868_v46 }
 0x20f   : > { %v2106_v45 = vpop.f32.mrf.mxu1  ;;  %v1162_v24 = vmul.f32 %v1066_v14, %v779_v10 }
 0x210   : > { %v2107_v32 = vadd.f32 %v2106_v45, %v2018_v56  ;;  %v781_v19 = vpop.f32.mrf.mxu2  ;;  %v1693_v29 = vpack.c.bf16 %v1636_v54, %v1633_v50  ;;  %v1948_v35 = vpop.f32.mrf.mxu3 }
 0x211   : > { %v4069_v47 = vadd.f32 %v781_v19, %v3546_v48  ;;  %v1258_v41 = vadd.f32 %v1162_v24, %v779_v10 }
 0x212   : > { %2174 = vst [vmem:[%s3982_s17 + $0x40] sm:$0xff] %v2107_v32  ;;  %2145 = vmatmul.bf16.gmra.mxu1 %v1693_v29 }
 0x213   : > { %v973_v1 = vmul.f32 0.044715, %v4069_v47  ;;  %v1354_v31 = vmul.f32 0.7978846, %v1258_v41  ;;  %v2791_v23 = vpop.eup %2790  ;;  %v877_v32 = vmul.f32 0.5, %v4069_v47 }
 0x214   : > { %v1543_v60 = vadd.f32 1.0, %v2791_v23 }
 0x215   : > { %v1069_v25 = vmul.f32 %v973_v1, %v4069_v47  ;;  %2792 = vtanh.f32 %v1354_v31 }
 0x216   : > { %v1639_v21 = vmul.f32 %v1543_v60, %v871_v4  ;;  %v1944_v60 = vadd.f32 %v3972_v42, %v4075_v9 }
 0x217   : > { %v2108_v26 = vpop.f32.mrf.mxu1  ;;  %v1165_v44 = vmul.f32 %v1069_v25, %v4069_v47 }
 0x218   : > { %v2109_v11 = vadd.f32 %v2108_v26, %v2020_v40  ;;  %v783_v63 = vpop.f32.mrf.mxu2 }
 0x219   : > { %v784_v62 = vadd.f32 %v783_v63, %v3546_v48  ;;  %v1261_v53 = vadd.f32 %v1165_v44, %v4069_v47  ;;  %v1941_v47 = vadd.f32 %v3972_v42, %v4062_v13  ;;  %v1950_v44 = vpop.f32.mrf.mxu3 }
 0x21a   : > { %2175 = vst [vmem:[%s3982_s17 + $0x48] sm:$0xff] %v2109_v11 }
 0x21b   : > { %v2793_v51 = vpop.eup %2792  ;;  %v976_v16 = vmul.f32 0.044715, %v784_v62  ;;  %v1357_v18 = vmul.f32 0.7978846, %v1261_v53  ;;  %v880_v30 = vmul.f32 0.5, %v784_v62  ;;  %v2030_v12 = vadd.f32 %v4066_v52, %v1941_v47 }
 0x21c   : > { %v1546_v33 = vadd.f32 1.0, %v2793_v51 }
 0x21d   : > { %v1072_v49 = vmul.f32 %v976_v16, %v784_v62  ;;  %2794 = vtanh.f32 %v1357_v18 }
 0x21e   : > { %v1642_v8 = vmul.f32 %v1546_v33, %v874_v6 }
 0x21f   : > { %v2111_v55 = vpop.f32.mrf.mxu1  ;;  %v1168_v3 = vmul.f32 %v1072_v49, %v784_v62  ;;  %v2033_v49 = vadd.f32 %v4085_v2, %v1944_v60 }
 0x220   : > { %v2112_v36 = vadd.f32 %v2111_v55, %v2023_v38  ;;  %v786_v58 = vpop.f32.mrf.mxu2  ;;  %v1696_v22 = vpack.c.bf16 %v1642_v8, %v1639_v21  ;;  %v1946_v55 = vadd.f32 %v3972_v42, %v4089_v61  ;;  %v1951_v61 = vadd.f32 %v3972_v42, %v1950_v44 }
 0x221   : > { %v787_v59 = vadd.f32 %v786_v58, %v3546_v48  ;;  %v1264_v7 = vadd.f32 %v1168_v3, %v784_v62  ;;  %v1953_v33 = vpop.f32.mrf.mxu3 }
 0x222   : > { %2176 = vst [vmem:[%s3982_s17 + $0x50] sm:$0xff] %v2112_v36  ;;  %2150 = vmatmul.bf16.gmra.mxu1 %v1696_v22  ;;  %v2035_v3 = vadd.f32 %v2034_v0, %v1946_v55 }
 0x223   : > { %v979_v39 = vmul.f32 0.044715, %v787_v59  ;;  %v1360_v10 = vmul.f32 0.7978846, %v1264_v7  ;;  %v2795_v57 = vpop.eup %2794  ;;  %v883_v4 = vmul.f32 0.5, %v787_v59 }
 0x224   : > { %v1549_v54 = vadd.f32 1.0, %v2795_v57 }
 0x225   : > { %v1075_v28 = vmul.f32 %v979_v39, %v787_v59  ;;  %2796 = vtanh.f32 %v1360_v10 }
 0x226   : > { %v1645_v1 = vmul.f32 %v1549_v54, %v877_v32 }
 0x227   : > { %v2113_v5 = vpop.f32.mrf.mxu1  ;;  %v1171_v46 = vmul.f32 %v1075_v28, %v787_v59 }
 0x228   : > { %v2114_v43 = vadd.f32 %v2113_v5, %v2025_v15  ;;  %v788_v14 = vpop.f32.mrf.mxu2  ;;  %v1954_v5 = vadd.f32 %v3972_v42, %v1953_v33 }
 0x229   : > { %v789_v56 = vadd.f32 %v788_v14, %v3546_v48  ;;  %v1267_v50 = vadd.f32 %v1171_v46, %v787_v59  ;;  %v2037_v48 = vpop.f32.mrf.mxu0  ;;  %v1955_v36 = vpop.f32.mrf.mxu3  ;;  %v1949_v59 = vadd.f32 %v3972_v42, %v1948_v35 }
 0x22a   : > { %2177 = vst [vmem:[%s3982_s17 + $0x58] sm:$0xff] %v2114_v43 }
 0x22b   : > { %v2797_v45 = vpop.eup %2796  ;;  %v982_v24 = vmul.f32 0.044715, %v789_v56  ;;  %v1363_v41 = vmul.f32 0.7978846, %v1267_v50  ;;  %v886_v13 = vmul.f32 0.5, %v789_v56  ;;  %v2038_v7 = vadd.f32 %v2037_v48, %v1949_v59 }
 0x22c   : > { %v1552_v19 = vadd.f32 1.0, %v2797_v45  ;;  %v1956_v50 = vadd.f32 %v3972_v42, %v1955_v36 }
 0x22d   : > { %v1078_v29 = vmul.f32 %v982_v24, %v789_v56  ;;  %2798 = vtanh.f32 %v1363_v41 }
 0x22e   : > { %v1648_v31 = vmul.f32 %v1552_v19, %v880_v30 }
 0x22f   : > { %v2116_v25 = vpop.f32.mrf.mxu1  ;;  %v1174_v40 = vmul.f32 %v1078_v29, %v789_v56 }
 0x230   : > { %v2117_v23 = vadd.f32 %v2116_v25, %v2028_v20  ;;  %v1699_v27 = vpack.c.bf16 %v1648_v31, %v1645_v1 }
 0x231   : > { %v1270_v26 = vadd.f32 %v1174_v40, %v789_v56  ;;  %v2039_v37 = vpop.f32.mrf.mxu0  ;;  %v1958_v10 = vpop.f32.mrf.mxu3 }
 0x232   : > { %2178 = vst [vmem:[%s3982_s17 + $0x60] sm:$0xff] %v2117_v23  ;;  %2155 = vmatmul.bf16.gmra.mxu1 %v1699_v27  ;;  %v2040_v28 = vadd.f32 %v2039_v37, %v1951_v61  ;;  %v1959_v32 = vadd.f32 %v3972_v42, %v1958_v10 }
 0x233   : > { %v1366_v11 = vmul.f32 0.7978846, %v1270_v26  ;;  %v2799_v63 = vpop.eup %2798 }
 0x234   : > { %v1555_v51 = vadd.f32 1.0, %v2799_v63 }
 0x235   : > { %2800 = vtanh.f32 %v1366_v11 }
 0x236   : > { %v1651_v18 = vmul.f32 %v1555_v51, %v883_v4 }
 0x237   : > { %v2118_v62 = vpop.f32.mrf.mxu1 }
 0x238   : > { %v2119_v53 = vadd.f32 %v2118_v62, %v2030_v12 }
 0x239   : > { %v2042_v9 = vpop.f32.mrf.mxu0  ;;  %v1960_v46 = vpop.f32.mrf.mxu3 }
 0x23a   : > { %2179 = vst [vmem:[%s3982_s17 + $0x68] sm:$0xff] %v2119_v53  ;;  %v2043_v43 = vadd.f32 %v2042_v9, %v1954_v5  ;;  %v1961_v1 = vadd.f32 %v3972_v42, %v1960_v46 }
 0x23b   : > { %v2801_v16 = vpop.eup %2800 }
 0x23c   : > { %v1558_v6 = vadd.f32 1.0, %v2801_v16 }
 0x23e   : > { %v1654_v52 = vmul.f32 %v1558_v6, %v886_v13 }
 0x23f   : > { %v2121_v38 = vpop.f32.mrf.mxu1 }
 0x240   : > { %v2122_v21 = vadd.f32 %v2121_v38, %v2033_v49  ;;  %v1702_v8 = vpack.c.bf16 %v1654_v52, %v1651_v18 }
 0x241   : > { %v2044_v2 = vpop.f32.mrf.mxu0  ;;  %v1963_v34 = vpop.f32.mrf.mxu3 }
 0x242   : > { %2180 = vst [vmem:[%s3982_s17 + $0x70] sm:$0xff] %v2122_v21  ;;  %2160 = vmatmul.bf16.gmra.mxu1 %v1702_v8  ;;  %v2045_v54 = vadd.f32 %v2044_v2, %v1956_v50  ;;  %v1964_v27 = vadd.f32 %v3972_v42, %v1963_v34 }
 0x247   : > { %v2123_v58 = vpop.f32.mrf.mxu1 }
 0x248   : > { %v2124_v22 = vadd.f32 %v2123_v58, %v2035_v3 }
 0x249   : > { %v2047_v15 = vpop.f32.mrf.mxu0  ;;  %v1965_v29 = vpop.f32.mrf.mxu3 }
 0x24a   : > { %2181 = vst [vmem:[%s3982_s17 + $0x78] sm:$0xff] %v2124_v22  ;;  %v2048_v19 = vadd.f32 %v2047_v15, %v1959_v32  ;;  %v1966_v12 = vadd.f32 %v3972_v42, %v1965_v29 }
 0x24f   : > { %v2126_v17 = vpop.f32.mrf.mxu1 }
 0x250   : > { %v2127_v39 = vadd.f32 %v2126_v17, %v2038_v7 }
 0x251   : > { %v2049_v56 = vpop.f32.mrf.mxu0  ;;  %v1968_v23 = vpop.f32.mrf.mxu3 }
 0x252   : > { %2182 = vst [vmem:[%s3982_s17 + $0x80] sm:$0xff] %v2127_v39  ;;  %v2050_v48 = vadd.f32 %v2049_v56, %v1961_v1  ;;  %v1969_v51 = vadd.f32 %v3972_v42, %v1968_v23 }
 0x257   : > { %v2128_v57 = vpop.f32.mrf.mxu1 }
 0x258   : > { %v2129_v0 = vadd.f32 %v2128_v57, %v2040_v28 }
 0x259   : > { %v2052_v30 = vpop.f32.mrf.mxu0  ;;  %v1970_v63 = vpop.f32.mrf.mxu3 }
 0x25a   : > { %2183 = vst [vmem:[%s3982_s17 + $0x88] sm:$0xff] %v2129_v0  ;;  %v2053_v26 = vadd.f32 %v2052_v30, %v1964_v27  ;;  %v1971_v33 = vadd.f32 %v3972_v42, %v1970_v63 }
 0x25f   : > { %v2131_v14 = vpop.f32.mrf.mxu1 }
 0x260   : > { %v2132_v35 = vadd.f32 %v2131_v14, %v2043_v43 }
 0x261   : > { %v2054_v31 = vpop.f32.mrf.mxu0  ;;  %v1973_v16 = vpop.f32.mrf.mxu3 }
 0x262   : > { %2184 = vst [vmem:[%s3982_s17 + $0x90] sm:$0xff] %v2132_v35  ;;  %v2055_v62 = vadd.f32 %v2054_v31, %v1966_v12  ;;  %v1974_v8 = vadd.f32 %v3972_v42, %v1973_v16 }
 0x267   : > { %v2133_v45 = vpop.f32.mrf.mxu1 }
 0x268   : > { %v2134_v24 = vadd.f32 %v2133_v45, %v2045_v54 }
 0x269   : > { %v2057_v47 = vpop.f32.mrf.mxu0  ;;  %v1975_v52 = vpop.f32.mrf.mxu3 }
 0x26a   : > { %2185 = vst [vmem:[%s3982_s17 + $0x98] sm:$0xff] %v2134_v24  ;;  %v2058_v4 = vadd.f32 %v2057_v47, %v1969_v51  ;;  %v1976_v22 = vadd.f32 %v3972_v42, %v1975_v52 }
 0x26f   : > { %v2136_v41 = vpop.f32.mrf.mxu1 }
 0x270   : > { %v2137_v20 = vadd.f32 %v2136_v41, %v2048_v19 }
 0x271   : > { %v2059_v60 = vpop.f32.mrf.mxu0  ;;  %v1978_v58 = vpop.f32.mrf.mxu3 }
 0x272   : > { %2186 = vst [vmem:[%s3982_s17 + $0xa0] sm:$0xff] %v2137_v20  ;;  %v2060_v18 = vadd.f32 %v2059_v60, %v1971_v33  ;;  %v1979_v39 = vadd.f32 %v3972_v42, %v1978_v58 }
 0x277   : > { %v2138_v25 = vpop.f32.mrf.mxu1 }
 0x278   : > { %v2139_v40 = vadd.f32 %v2138_v25, %v2050_v48 }
 0x279   : > { %v2062_v49 = vpop.f32.mrf.mxu0  ;;  %v1980_v10 = vpop.f32.mrf.mxu3 }
 0x27a   : > { %2187 = vst [vmem:[%s3982_s17 + $0xa8] sm:$0xff] %v2139_v40  ;;  %v2063_v9 = vadd.f32 %v2062_v49, %v1974_v8  ;;  %v1981_v0 = vadd.f32 %v3972_v42, %v1980_v10 }
 0x27f   : > { %v2141_v44 = vpop.f32.mrf.mxu1 }
 0x280   : > { %v2142_v11 = vadd.f32 %v2141_v44, %v2053_v26 }
 0x281   : > { %v2064_v55 = vpop.f32.mrf.mxu0  ;;  %v1983_v5 = vpop.f32.mrf.mxu3 }
 0x282   : > { %2188 = vst [vmem:[%s3982_s17 + $0xb0] sm:$0xff] %v2142_v11  ;;  %v2065_v59 = vadd.f32 %v2064_v55, %v1976_v22  ;;  %v1984_v35 = vadd.f32 %v3972_v42, %v1983_v5 }
 0x287   : > { %v2143_v53 = vpop.f32.mrf.mxu1 }
 0x288   : > { %v2144_v37 = vadd.f32 %v2143_v53, %v2055_v62 }
 0x289   : > { %v2067_v2 = vpop.f32.mrf.mxu0  ;;  %v1985_v34 = vpop.f32.mrf.mxu3 }
 0x28a   : > { %2189 = vst [vmem:[%s3982_s17 + $0xb8] sm:$0xff] %v2144_v37  ;;  %v2068_v61 = vadd.f32 %v2067_v2, %v1979_v39  ;;  %v1986_v24 = vadd.f32 %v3972_v42, %v1985_v34 }
 0x28f   : > { %v2146_v13 = vpop.f32.mrf.mxu1 }
 0x290   : > { %v2147_v6 = vadd.f32 %v2146_v13, %v2058_v4 }
 0x291   : > { %v2069_v57 = vpop.f32.mrf.mxu0 }
 0x292   : > { %2190 = vst [vmem:[%s3982_s17 + $0xc0] sm:$0xff] %v2147_v6  ;;  %v2070_v46 = vadd.f32 %v2069_v57, %v1981_v0 }
 0x297   : > { %v2148_v38 = vpop.f32.mrf.mxu1 }
 0x298   : > { %v2149_v21 = vadd.f32 %v2148_v38, %v2060_v18 }
 0x299   : > { %v2072_v56 = vpop.f32.mrf.mxu0 }
 0x29a   : > { %2191 = vst [vmem:[%s3982_s17 + $0xc8] sm:$0xff] %v2149_v21  ;;  %v2073_v50 = vadd.f32 %v2072_v56, %v1984_v35 }
 0x29f   : > { %v2151_v3 = vpop.f32.mrf.mxu1 }
 0x2a0   : > { %v2152_v36 = vadd.f32 %v2151_v3, %v2063_v9 }
 0x2a1   : > { %v2074_v32 = vpop.f32.mrf.mxu0 }
 0x2a2   : > { %2192 = vst [vmem:[%s3982_s17 + $0xd0] sm:$0xff] %v2152_v36  ;;  %v2075_v30 = vadd.f32 %v2074_v32, %v1986_v24 }
 0x2a7   : > { %v2153_v7 = vpop.f32.mrf.mxu1 }
 0x2a8   : > { %v2154_v17 = vadd.f32 %v2153_v7, %v2065_v59 }
 0x2aa   : > { %2193 = vst [vmem:[%s3982_s17 + $0xd8] sm:$0xff] %v2154_v17 }
 0x2af   : > { %v2156_v28 = vpop.f32.mrf.mxu1 }
 0x2b0   : > { %v2157_v15 = vadd.f32 %v2156_v28, %v2068_v61 }
 0x2b2   : > { %2194 = vst [vmem:[%s3982_s17 + $0xe0] sm:$0xff] %v2157_v15 }
 0x2b7   : > { %v2158_v43 = vpop.f32.mrf.mxu1 }
 0x2b8   : > { %v2159_v14 = vadd.f32 %v2158_v43, %v2070_v46 }
 0x2ba   : > { %2195 = vst [vmem:[%s3982_s17 + $0xe8] sm:$0xff] %v2159_v14 }
 0x2bf   : > { %v2161_v54 = vpop.f32.mrf.mxu1 }
 0x2c0   : > { %v2162_v45 = vadd.f32 %v2161_v54, %v2073_v50 }
 0x2c2   : > { %2196 = vst [vmem:[%s3982_s17 + $0xf0] sm:$0xff] %v2162_v45 }
 0x2c7   : > { %v2163_v19 = vpop.f32.mrf.mxu1 }
 0x2c8   : > { %v2164_v29 = vadd.f32 %v2163_v19, %v2075_v30 }
 0x2ca   : > { %2197 = vst [vmem:[%s3982_s17 + $0xf8] sm:$0xff] %v2164_v29 }
 0x2cb PF: > { %s15_s18 = sadd.s32 1, %s2818_s18  }
 0x2cc   : > { %p12_p4 = scmp.ge.s32.totalorder %s15_s18, 4  }
 0x2ce   :  { %14 = sbr.rel (!%p12_p4) target bundleno = 1 (0x1), region = 70 }

</bundles_post_ra>
